<compile_context>
chip_gen: v7x
topology: tpu7x:2x2x1
jax: 0.10.0
libtpu: 0.0.40
codegen_flags: <defaults>
</compile_context>

<pallas_src>
import math
import functools

import jax
import jax.numpy as jnp
from jax.experimental import pallas as pl
from jax.experimental.pallas import tpu as pltpu


# ------------------------------------------------------------------ helpers --

def _round_up(x, m):
    return (x + m - 1) // m * m


def _ln_body(x, g, b, eps):
    mean = jnp.mean(x, axis=-1, keepdims=True)
    xc = x - mean
    var = jnp.mean(xc * xc, axis=-1, keepdims=True)
    return xc * jax.lax.rsqrt(var + eps) * g + b


# ------------------------------------------------------------------ kernels --

def _linear_kernel(x_ref, w_ref, b_ref, o_ref, acc_ref, *, act):
    """Tiled matmul with K-axis accumulation in VMEM scratch."""
    @pl.when(pl.program_id(2) == 0)
    def _():
        acc_ref[...] = jnp.zeros_like(acc_ref)

    acc_ref[...] += jnp.dot(x_ref[...], w_ref[...],
                            preferred_element_type=jnp.float32)

    @pl.when(pl.program_id(2) == pl.num_programs(2) - 1)
    def _():
        y = acc_ref[...] + b_ref[...]
        if act == "relu":
            y = jnp.maximum(y, 0.0)
        o_ref[...] = y


def linear_pallas(x, w, b, act=None, tm_max=256, tn_max=512, tk_max=512):
    """x:(M,K) w:(K,N) b:(N,) -> (M,N), tiled over M/N/K with f32 accumulator."""
    M, K = x.shape
    N = w.shape[1]
    tm = min(_round_up(M, 8), tm_max)
    tn = min(_round_up(N, 128), tn_max)
    tk = min(_round_up(K, 128), tk_max)
    Mp, Kp, Np = _round_up(M, tm), _round_up(K, tk), _round_up(N, tn)

    xp = x if (Mp == M and Kp == K) else jnp.pad(x, ((0, Mp - M), (0, Kp - K)))
    wp = w if (Kp == K and Np == N) else jnp.pad(w, ((0, Kp - K), (0, Np - N)))
    bp = b if Np == N else jnp.pad(b, (0, Np - N))

    out = pl.pallas_call(
        functools.partial(_linear_kernel, act=act),
        grid=(Mp // tm, Np // tn, Kp // tk),
        in_specs=[
            pl.BlockSpec((tm, tk), lambda i, j, k: (i, k)),
            pl.BlockSpec((tk, tn), lambda i, j, k: (k, j)),
            pl.BlockSpec((1, tn), lambda i, j, k: (0, j)),
        ],
        out_specs=pl.BlockSpec((tm, tn), lambda i, j, k: (i, j)),
        out_shape=jax.ShapeDtypeStruct((Mp, Np), jnp.float32),
        scratch_shapes=[pltpu.VMEM((tm, tn), jnp.float32)],
        compiler_params=pltpu.CompilerParams(
            dimension_semantics=("parallel", "parallel", "arbitrary")),
    )(xp, wp, bp.reshape(1, Np))

    if Mp != M or Np != N:
        out = out[:M, :N]
    return out


def _ln_kernel(x_ref, g_ref, b_ref, o_ref, *, eps):
    o_ref[...] = _ln_body(x_ref[...], g_ref[...], b_ref[...], eps)


def layernorm_pallas(x, g, b, eps=1e-5, tm_max=512):
    """Plain LayerNorm over the last dim (matches torch.nn.LayerNorm)."""
    M, E = x.shape
    tm = min(_round_up(M, 8), tm_max)
    Mp = _round_up(M, tm)
    xp = x if Mp == M else jnp.pad(x, ((0, Mp - M), (0, 0)))
    out = pl.pallas_call(
        functools.partial(_ln_kernel, eps=eps),
        grid=(Mp // tm,),
        in_specs=[
            pl.BlockSpec((tm, E), lambda i: (i, 0)),
            pl.BlockSpec((1, E), lambda i: (0, 0)),
            pl.BlockSpec((1, E), lambda i: (0, 0)),
        ],
        out_specs=pl.BlockSpec((tm, E), lambda i: (i, 0)),
        out_shape=jax.ShapeDtypeStruct((Mp, E), jnp.float32),
        compiler_params=pltpu.CompilerParams(dimension_semantics=("parallel",)),
    )(xp, g.reshape(1, E), b.reshape(1, E))
    return out[:M] if Mp != M else out


def _proj_res_ln_kernel(a_ref, w_ref, b_ref, r_ref, g_ref, bb_ref, o_ref, *, eps):
    """out = LayerNorm(residual + a @ w + b)  — fused out-projection."""
    y = jnp.dot(a_ref[...], w_ref[...], preferred_element_type=jnp.float32)
    y = y + b_ref[...]
    o_ref[...] = _ln_body(r_ref[...] + y, g_ref[...], bb_ref[...], eps)


def proj_res_ln_pallas(a, w, b, res, g, beta, eps=1e-5, tm_max=256):
    M, E = a.shape
    N = w.shape[1]
    tm = min(_round_up(M, 8), tm_max)
    Mp = _round_up(M, tm)
    pad = Mp - M
    ap = jnp.pad(a, ((0, pad), (0, 0))) if pad else a
    rp = jnp.pad(res, ((0, pad), (0, 0))) if pad else res
    out = pl.pallas_call(
        functools.partial(_proj_res_ln_kernel, eps=eps),
        grid=(Mp // tm,),
        in_specs=[
            pl.BlockSpec((tm, E), lambda i: (i, 0)),
            pl.BlockSpec((E, N), lambda i: (0, 0)),
            pl.BlockSpec((1, N), lambda i: (0, 0)),
            pl.BlockSpec((tm, N), lambda i: (i, 0)),
            pl.BlockSpec((1, N), lambda i: (0, 0)),
            pl.BlockSpec((1, N), lambda i: (0, 0)),
        ],
        out_specs=pl.BlockSpec((tm, N), lambda i: (i, 0)),
        out_shape=jax.ShapeDtypeStruct((Mp, N), jnp.float32),
        compiler_params=pltpu.CompilerParams(dimension_semantics=("parallel",)),
    )(ap, w, b.reshape(1, N), rp, g.reshape(1, N), beta.reshape(1, N))
    return out[:M] if pad else out


def _ffn_res_ln_kernel(x_ref, w1_ref, b1_ref, w2_ref, b2_ref, g_ref, bb_ref,
                       o_ref, *, eps):
    """out = LayerNorm(x + relu(x@w1+b1)@w2 + b2) — hidden stays in VMEM."""
    x = x_ref[...]
    h = jnp.dot(x, w1_ref[...], preferred_element_type=jnp.float32) + b1_ref[...]
    h = jnp.maximum(h, 0.0)
    ff = jnp.dot(h, w2_ref[...], preferred_element_type=jnp.float32) + b2_ref[...]
    o_ref[...] = _ln_body(x + ff, g_ref[...], bb_ref[...], eps)


def ffn_res_ln_pallas(x, w1, b1, w2, b2, g, beta, eps=1e-5, tm_max=256):
    M, E = x.shape
    F = w1.shape[1]
    tm = min(_round_up(M, 8), tm_max)
    Mp = _round_up(M, tm)
    pad = Mp - M
    xp = jnp.pad(x, ((0, pad), (0, 0))) if pad else x
    out = pl.pallas_call(
        functools.partial(_ffn_res_ln_kernel, eps=eps),
        grid=(Mp // tm,),
        in_specs=[
            pl.BlockSpec((tm, E), lambda i: (i, 0)),
            pl.BlockSpec((E, F), lambda i: (0, 0)),
            pl.BlockSpec((1, F), lambda i: (0, 0)),
            pl.BlockSpec((F, E), lambda i: (0, 0)),
            pl.BlockSpec((1, E), lambda i: (0, 0)),
            pl.BlockSpec((1, E), lambda i: (0, 0)),
            pl.BlockSpec((1, E), lambda i: (0, 0)),
        ],
        out_specs=pl.BlockSpec((tm, E), lambda i: (i, 0)),
        out_shape=jax.ShapeDtypeStruct((Mp, E), jnp.float32),
        compiler_params=pltpu.CompilerParams(dimension_semantics=("parallel",)),
    )(xp, w1, b1.reshape(1, F), w2, b2.reshape(1, E),
      g.reshape(1, E), beta.reshape(1, E))
    return out[:M] if pad else out


def _attn_kernel(q_ref, k_ref, v_ref, am_ref, kpm_ref, o_ref, *, scale):
    q = q_ref[0, 0] * scale            # fold 1/sqrt(Dh) into q (Lq x Dh, cheap)
    k = k_ref[0, 0]                    # (Lk, Dh)
    v = v_ref[0, 0]                    # (Lk, Dh)
    s = jax.lax.dot_general(q, k, (((1,), (1,)), ((), ())),
                            preferred_element_type=jnp.float32)      # (Lq, Lk)
    s = s + am_ref[...] + kpm_ref[0]   # additive attn mask + per-batch padding
    s = s - jnp.max(s, axis=-1, keepdims=True)
    p = jnp.exp(s)
    inv = pl.reciprocal(jnp.sum(p, axis=-1, keepdims=True), approx=True)
    o_ref[0, 0] = jnp.dot(p, v, preferred_element_type=jnp.float32) * inv


def attention_pallas(q, k, v, attn_mask, kpm_add, scale):
    """q:(B,H,Lq,Dh) k,v:(B,H,Lk,Dh) attn_mask:(Lq,Lk) kpm_add:(B,1,Lk)."""
    # TODO(synk): flash-style Lk tiling (running max/denominator) is not
    # implemented; the full (Lq,Lk) score block is held in VMEM per (b,h).
    B, H, Lq, Dh = q.shape
    Lk = k.shape[2]
    return pl.pallas_call(
        functools.partial(_attn_kernel, scale=scale),
        grid=(B, H),
        in_specs=[
            pl.BlockSpec((1, 1, Lq, Dh), lambda b, h: (b, h, 0, 0)),
            pl.BlockSpec((1, 1, Lk, Dh), lambda b, h: (b, h, 0, 0)),
            pl.BlockSpec((1, 1, Lk, Dh), lambda b, h: (b, h, 0, 0)),
            pl.BlockSpec((Lq, Lk), lambda b, h: (0, 0)),
            pl.BlockSpec((1, 1, Lk), lambda b, h: (b, 0, 0)),
        ],
        out_specs=pl.BlockSpec((1, 1, Lq, Dh), lambda b, h: (b, h, 0, 0)),
        out_shape=jax.ShapeDtypeStruct((B, H, Lq, Dh), jnp.float32),
        compiler_params=pltpu.CompilerParams(
            dimension_semantics=("parallel", "parallel")),
    )(q, k, v, attn_mask, kpm_add)


# ----------------------------------------------------------- model (glue) ----

def positional_encoding_table(emb_size, maxlen=5000):
    den = jnp.exp(-jnp.arange(0, emb_size, 2, dtype=jnp.float32)
                  * math.log(10000.0) / emb_size)
    pos = jnp.arange(0, maxlen, dtype=jnp.float32).reshape(maxlen, 1)
    pe = jnp.zeros((maxlen, emb_size), jnp.float32)
    pe = pe.at[:, 0::2].set(jnp.sin(pos * den))
    pe = pe.at[:, 1::2].set(jnp.cos(pos * den))
    return pe[:, None, :]          # (maxlen, 1, emb)


def _dense(key, fan_in, fan_out):
    return jax.random.normal(key, (fan_in, fan_out), jnp.float32) * 0.02


def _self_attn_params(key, E):
    ks = jax.random.split(key, 2)
    return {
        "w_qkv": _dense(ks[0], E, 3 * E), "b_qkv": jnp.zeros((3 * E,), jnp.float32),
        "w_o": _dense(ks[1], E, E), "b_o": jnp.zeros((E,), jnp.float32),
    }


def _cross_attn_params(key, E):
    ks = jax.random.split(key, 3)
    return {
        "w_q": _dense(ks[0], E, E), "b_q": jnp.zeros((E,), jnp.float32),
        "w_kv": _dense(ks[1], E, 2 * E), "b_kv": jnp.zeros((2 * E,), jnp.float32),
        "w_o": _dense(ks[2], E, E), "b_o": jnp.zeros((E,), jnp.float32),
    }


def _enc_layer_params(key, E, F):
    ks = jax.random.split(key, 3)
    return {
        "self_attn": _self_attn_params(ks[0], E),
        "norm1_g": jnp.ones((E,), jnp.float32), "norm1_b": jnp.zeros((E,), jnp.float32),
        "lin1_w": _dense(ks[1], E, F), "lin1_b": jnp.zeros((F,), jnp.float32),
        "lin2_w": _dense(ks[2], F, E), "lin2_b": jnp.zeros((E,), jnp.float32),
        "norm2_g": jnp.ones((E,), jnp.float32), "norm2_b": jnp.zeros((E,), jnp.float32),
    }


def _dec_layer_params(key, E, F):
    ks = jax.random.split(key, 4)
    return {
        "self_attn": _self_attn_params(ks[0], E),
        "cross_attn": _cross_attn_params(ks[1], E),
        "norm1_g": jnp.ones((E,), jnp.float32), "norm1_b": jnp.zeros((E,), jnp.float32),
        "norm2_g": jnp.ones((E,), jnp.float32), "norm2_b": jnp.zeros((E,), jnp.float32),
        "lin1_w": _dense(ks[2], E, F), "lin1_b": jnp.zeros((F,), jnp.float32),
        "lin2_w": _dense(ks[3], F, E), "lin2_b": jnp.zeros((E,), jnp.float32),
        "norm3_g": jnp.ones((E,), jnp.float32), "norm3_b": jnp.zeros((E,), jnp.float32),
    }


def init_params(key, num_enc, num_dec, E, F, src_vocab, tgt_vocab):
    ks = jax.random.split(key, num_enc + num_dec + 3)
    return {
        "src_emb": jax.random.normal(ks[0], (src_vocab, E), jnp.float32),
        "tgt_emb": jax.random.normal(ks[1], (tgt_vocab, E), jnp.float32),
        "pos_emb": positional_encoding_table(E),
        "enc_layers": [_enc_layer_params(ks[2 + i], E, F) for i in range(num_enc)],
        "dec_layers": [_dec_layer_params(ks[2 + num_enc + i], E, F) for i in range(num_dec)],
        "enc_norm_g": jnp.ones((E,), jnp.float32), "enc_norm_b": jnp.zeros((E,), jnp.float32),
        "dec_norm_g": jnp.ones((E,), jnp.float32), "dec_norm_b": jnp.zeros((E,), jnp.float32),
        "gen_w": _dense(ks[2 + num_enc + num_dec], E, tgt_vocab),
        "gen_b": jnp.zeros((tgt_vocab,), jnp.float32),
    }


def mha(x_q, x_kv, attn_mask, key_padding_mask, p, nhead, *, self_attn):
    """Multi-head attention (without out-projection; that is fused downstream).
    x_q:(Lq,B,E), x_kv:(Lk,B,E) -> (Lq*B, E) attention output per head merged."""
    Lq, B, E = x_q.shape
    Lk = x_kv.shape[0]
    Dh = E // nhead

    if self_attn:
        qkv = linear_pallas(x_q.reshape(Lq * B, E), p["w_qkv"], p["b_qkv"])
        qkv = qkv.reshape(Lq, B, 3, nhead, Dh)
        q, k, v = qkv[:, :, 0], qkv[:, :, 1], qkv[:, :, 2]
    else:
        q = linear_pallas(x_q.reshape(Lq * B, E), p["w_q"], p["b_q"]) \
            .reshape(Lq, B, nhead, Dh)
        kv = linear_pallas(x_kv.reshape(Lk * B, E), p["w_kv"], p["b_kv"]) \
            .reshape(Lk, B, 2, nhead, Dh)
        k, v = kv[:, :, 0], kv[:, :, 1]

    # TODO(synk): head split/merge transposes remain XLA-level; BlockSpec
    # index_map decomposition of (L,B,H,Dh) would remove this HBM shuffle.
    q = q.transpose(1, 2, 0, 3)    # (B, H, Lq, Dh)
    k = k.transpose(1, 2, 0, 3)    # (B, H, Lk, Dh)
    v = v.transpose(1, 2, 0, 3)

    if attn_mask is None:
        am = jnp.zeros((Lq, Lk), jnp.float32)
    else:
        am = attn_mask.astype(jnp.float32)
    if key_padding_mask is None:
        kpm = jnp.zeros((B, 1, Lk), jnp.float32)
    else:
        kpm = jnp.where(key_padding_mask[:, None, :],
                        jnp.float32(-1e9), jnp.float32(0.0))

    o = attention_pallas(q, k, v, am, kpm, scale=1.0 / math.sqrt(Dh))
    return o.transpose(2, 0, 1, 3).reshape(Lq * B, E)


def encoder_layer(x, p, nhead, src_mask, src_kpm):
    L, B, E = x.shape
    attn = mha(x, x, src_mask, src_kpm, p["self_attn"], nhead, self_attn=True)
    x1 = proj_res_ln_pallas(attn, p["self_attn"]["w_o"], p["self_attn"]["b_o"],
                            x.reshape(L * B, E), p["norm1_g"], p["norm1_b"])
    x2 = ffn_res_ln_pallas(x1, p["lin1_w"], p["lin1_b"], p["lin2_w"], p["lin2_b"],
                           p["norm2_g"], p["norm2_b"])
    return x2.reshape(L, B, E)


def decoder_layer(x, memory, p, nhead, tgt_mask, tgt_kpm, mem_kpm):
    L, B, E = x.shape
    sa = mha(x, x, tgt_mask, tgt_kpm, p["self_attn"], nhead, self_attn=True)
    x1 = proj_res_ln_pallas(sa, p["self_attn"]["w_o"], p["self_attn"]["b_o"],
                            x.reshape(L * B, E), p["norm1_g"], p["norm1_b"])
    ca = mha(x1.reshape(L, B, E), memory, None, mem_kpm,
             p["cross_attn"], nhead, self_attn=False)
    x2 = proj_res_ln_pallas(ca, p["cross_attn"]["w_o"], p["cross_attn"]["b_o"],
                            x1, p["norm2_g"], p["norm2_b"])
    x3 = ffn_res_ln_pallas(x2, p["lin1_w"], p["lin1_b"], p["lin2_w"], p["lin2_b"],
                           p["norm3_g"], p["norm3_b"])
    return x3.reshape(L, B, E)


def seq2seq_forward(params, src, tgt, src_mask, tgt_mask,
                    src_padding_mask, tgt_padding_mask, memory_key_padding_mask,
                    *, nhead):
    E = params["src_emb"].shape[1]
    Ls, B = src.shape
    Lt = tgt.shape[0]

    # TokenEmbedding (* sqrt(E)) + PositionalEncoding (dropout = identity / eval).
    # TODO(synk): embedding gather (jnp.take) kept in plain JAX glue, not Pallas.
    src_emb = jnp.take(params["src_emb"], src, axis=0) * math.sqrt(E) \
        + params["pos_emb"][:Ls]
    tgt_emb = jnp.take(params["tgt_emb"], tgt, axis=0) * math.sqrt(E) \
        + params["pos_emb"][:Lt]

    memory = src_emb
    for p in params["enc_layers"]:
        memory = encoder_layer(memory, p, nhead, src_mask, src_padding_mask)
    memory = layernorm_pallas(memory.reshape(Ls * B, E),
                              params["enc_norm_g"], params["enc_norm_b"]).reshape(Ls, B, E)

    out = tgt_emb
    for p in params["dec_layers"]:
        out = decoder_layer(out, memory, p, nhead, tgt_mask,
                            tgt_padding_mask, memory_key_padding_mask)
    out = layernorm_pallas(out.reshape(Lt * B, E),
                           params["dec_norm_g"], params["dec_norm_b"])

    logits = linear_pallas(out, params["gen_w"], params["gen_b"])
    return logits.reshape(Lt, B, -1)


# ---------------------------------------------------------------------- main -

if __name__ == "__main__":
    NUM_ENC, NUM_DEC = 2, 2
    EMB, NHEAD, FF = 32, 4, 64
    SRC_VOCAB, TGT_VOCAB = 50, 60
    B, LS, LT = 2, 8, 6

    key = jax.random.PRNGKey(0)
    kp, ks, kt = jax.random.split(key, 3)
    params = init_params(kp, NUM_ENC, NUM_DEC, EMB, FF, SRC_VOCAB, TGT_VOCAB)

    src = jax.random.randint(ks, (LS, B), 0, SRC_VOCAB, dtype=jnp.int32)
    tgt = jax.random.randint(kt, (LT, B), 0, TGT_VOCAB, dtype=jnp.int32)

    # src_mask: zeros (no masking); tgt_mask: causal additive mask.
    src_mask = jnp.zeros((LS, LS), jnp.float32)
    tgt_mask = jnp.where(jnp.triu(jnp.ones((LT, LT), bool), k=1),
                         jnp.float32(-1e9), jnp.float32(0.0))
    # Padding masks (True = pad): pad last source position of batch 1,
    # last target position of batch 0.
    src_padding_mask = jnp.zeros((B, LS), bool).at[1, LS - 1].set(True)
    tgt_padding_mask = jnp.zeros((B, LT), bool).at[0, LT - 1].set(True)
    memory_key_padding_mask = src_padding_mask

    fwd = jax.jit(functools.partial(seq2seq_forward, nhead=NHEAD))
    logits = fwd(params, src, tgt, src_mask, tgt_mask,
                 src_padding_mask, tgt_padding_mask, memory_key_padding_mask)
    jax.block_until_ready(logits)

    assert logits.shape == (LT, B, TGT_VOCAB), logits.shape
    assert bool(jnp.all(jnp.isfinite(logits)))
    print("KERNEL_OK")
</pallas_src>

<mosaic_0001>
module attributes {stable_mosaic.version = 11 : i64} {
  func.func @_linear_kernel(%arg0: i32, %arg1: i32, %arg2: i32, %arg3: memref<16x128xf32, #tpu.memory_space<vmem>>, %arg4: memref<128x128xf32, #tpu.memory_space<vmem>>, %arg5: memref<1x128xf32, #tpu.memory_space<vmem>>, %arg6: memref<16x128xf32, #tpu.memory_space<vmem>>, %arg7: memref<16x128xf32, #tpu.memory_space<vmem>>) attributes {dimension_semantics = [#tpu.dimension_semantics<parallel>, #tpu.dimension_semantics<parallel>, #tpu.dimension_semantics<arbitrary>], iteration_bounds = array<i64: 1, 1, 1>, scalar_prefetch = 0 : i64, scratch_operands = 1 : i64, tpu.core_type = #tpu.core_type<tc>, window_params = [{transform_indices = @transform_0, window_bounds = array<i64: 16, 128>}, {transform_indices = @transform_1, window_bounds = array<i64: 128, 128>}, {transform_indices = @transform_2, window_bounds = array<i64: 1, 128>}, {transform_indices = @transform_3, window_bounds = array<i64: 16, 128>}]} {
    %c0_i32 = arith.constant 0 : i32
    %0 = arith.cmpi eq, %arg2, %c0_i32 : i32
    %1 = arith.extui %0 : i1 to i32
    %c0_i32_0 = arith.constant 0 : i32
    %2 = arith.cmpi ne, %1, %c0_i32_0 : i32
    scf.if %2 {
      %cst_10 = arith.constant 0.000000e+00 : f32
      %12 = vector.broadcast %cst_10 : f32 to vector<16x128xf32>
      %c0_11 = arith.constant 0 : index
      %c0_12 = arith.constant 0 : index
      %13 = vector.load %arg7[%c0_11, %c0_12] : memref<16x128xf32, #tpu.memory_space<vmem>>, vector<16x128xf32>
      tpu.vector_store %arg7[%c0_11, %c0_12], %12 {strides = array<i32>} : memref<16x128xf32, #tpu.memory_space<vmem>>, vector<16x128xf32>,
    } else {
    }
    %c0 = arith.constant 0 : index
    %c0_1 = arith.constant 0 : index
    %3 = vector.load %arg7[%c0, %c0_1] : memref<16x128xf32, #tpu.memory_space<vmem>>, vector<16x128xf32>
    %c0_2 = arith.constant 0 : index
    %c0_3 = arith.constant 0 : index
    %4 = vector.load %arg3[%c0_2, %c0_3] : memref<16x128xf32, #tpu.memory_space<vmem>>, vector<16x128xf32>
    %c0_4 = arith.constant 0 : index
    %c0_5 = arith.constant 0 : index
    %5 = vector.load %arg4[%c0_4, %c0_5] : memref<128x128xf32, #tpu.memory_space<vmem>>, vector<128x128xf32>
    %cst = arith.constant dense<0.000000e+00> : vector<16x128xf32>
    %6 = tpu.matmul %4, %5, %cst {dimension_numbers = #tpu.dot_dimension_numbers<[1], [0], [0], [1], [0, 0, 1, 1], [], []>} : vector<16x128xf32>, vector<128x128xf32>, vector<16x128xf32> -> vector<16x128xf32>
    %7 = arith.addf %3, %6 : vector<16x128xf32>
    %c0_6 = arith.constant 0 : index
    %c0_7 = arith.constant 0 : index
    %8 = vector.load %arg7[%c0_6, %c0_7] : memref<16x128xf32, #tpu.memory_space<vmem>>, vector<16x128xf32>
    tpu.vector_store %arg7[%c0_6, %c0_7], %7 {strides = array<i32>} : memref<16x128xf32, #tpu.memory_space<vmem>>, vector<16x128xf32>,
    %c0_i32_8 = arith.constant 0 : i32
    %9 = arith.cmpi eq, %arg2, %c0_i32_8 : i32
    %10 = arith.extui %9 : i1 to i32
    %c0_i32_9 = arith.constant 0 : i32
    %11 = arith.cmpi ne, %10, %c0_i32_9 : i32
    scf.if %11 {
      %c0_10 = arith.constant 0 : index
      %c0_11 = arith.constant 0 : index
      %12 = vector.load %arg7[%c0_10, %c0_11] : memref<16x128xf32, #tpu.memory_space<vmem>>, vector<16x128xf32>
      %c0_12 = arith.constant 0 : index
      %c0_13 = arith.constant 0 : index
      %13 = vector.load %arg5[%c0_12, %c0_13] : memref<1x128xf32, #tpu.memory_space<vmem>>, vector<1x128xf32>
      %14 = vector.broadcast %13 : vector<1x128xf32> to vector<16x128xf32>
      %15 = arith.addf %12, %14 : vector<16x128xf32>
      %c0_14 = arith.constant 0 : index
      %c0_15 = arith.constant 0 : index
      %16 = vector.load %arg6[%c0_14, %c0_15] : memref<16x128xf32, #tpu.memory_space<vmem>>, vector<16x128xf32>
      tpu.vector_store %arg6[%c0_14, %c0_15], %15 {strides = array<i32>} : memref<16x128xf32, #tpu.memory_space<vmem>>, vector<16x128xf32>,
    } else {
    }
    return
  }
  func.func @transform_0(%arg0: i32, %arg1: i32, %arg2: i32) -> (i32, i32) {
    %c0_i32 = arith.constant 0 : i32
    return %arg0, %arg2 : i32, i32
  }
  func.func @transform_1(%arg0: i32, %arg1: i32, %arg2: i32) -> (i32, i32) {
    %c0_i32 = arith.constant 0 : i32
    return %arg2, %arg1 : i32, i32
  }
  func.func @transform_2(%arg0: i32, %arg1: i32, %arg2: i32) -> (i32, i32) {
    %c0_i32 = arith.constant 0 : i32
    %c0_i32_0 = arith.constant 0 : i32
    return %c0_i32, %arg1 : i32, i32
  }
  func.func @transform_3(%arg0: i32, %arg1: i32, %arg2: i32) -> (i32, i32) {
    %c0_i32 = arith.constant 0 : i32
    return %arg0, %arg1 : i32, i32
  }
}

module attributes {stable_mosaic.version = 11 : i64} {
  func.func @_attn_kernel(%arg0: i32, %arg1: i32, %arg2: memref<1x1x8x8xf32, #tpu.memory_space<vmem>>, %arg3: memref<1x1x8x8xf32, #tpu.memory_space<vmem>>, %arg4: memref<1x1x8x8xf32, #tpu.memory_space<vmem>>, %arg5: memref<8x8xf32, #tpu.memory_space<vmem>>, %arg6: memref<1x1x8xf32, #tpu.memory_space<vmem>>, %arg7: memref<1x1x8x8xf32, #tpu.memory_space<vmem>>) attributes {dimension_semantics = [#tpu.dimension_semantics<parallel>, #tpu.dimension_semantics<parallel>], iteration_bounds = array<i64: 2, 4>, scalar_prefetch = 0 : i64, scratch_operands = 0 : i64, tpu.core_type = #tpu.core_type<tc>, window_params = [{transform_indices = @transform_0, window_bounds = array<i64: 1, 1, 8, 8>}, {transform_indices = @transform_1, window_bounds = array<i64: 1, 1, 8, 8>}, {transform_indices = @transform_2, window_bounds = array<i64: 1, 1, 8, 8>}, {pipeline_mode = #tpu.pipeline_mode<synchronous>, transform_indices = @transform_3, window_bounds = array<i64: 8, 8>}, {transform_indices = @transform_4, window_bounds = array<i64: 1, 1, 8>}, {transform_indices = @transform_5, window_bounds = array<i64: 1, 1, 8, 8>}]} {
    %c0 = arith.constant 0 : index
    %c0_0 = arith.constant 0 : index
    %c0_1 = arith.constant 0 : index
    %c0_2 = arith.constant 0 : index
    %0 = vector.load %arg2[%c0, %c0_0, %c0_1, %c0_2] : memref<1x1x8x8xf32, #tpu.memory_space<vmem>>, vector<1x1x8x8xf32>
    %1 = vector.shape_cast %0 : vector<1x1x8x8xf32> to vector<8x8xf32>
    %cst = arith.constant 0.353553385 : f32
    %2 = vector.broadcast %cst : f32 to vector<8x8xf32>
    %3 = arith.mulf %1, %2 : vector<8x8xf32>
    %c0_3 = arith.constant 0 : index
    %c0_4 = arith.constant 0 : index
    %c0_5 = arith.constant 0 : index
    %c0_6 = arith.constant 0 : index
    %4 = vector.load %arg3[%c0_3, %c0_4, %c0_5, %c0_6] : memref<1x1x8x8xf32, #tpu.memory_space<vmem>>, vector<1x1x8x8xf32>
    %5 = vector.shape_cast %4 : vector<1x1x8x8xf32> to vector<8x8xf32>
    %c0_7 = arith.constant 0 : index
    %c0_8 = arith.constant 0 : index
    %c0_9 = arith.constant 0 : index
    %c0_10 = arith.constant 0 : index
    %6 = vector.load %arg4[%c0_7, %c0_8, %c0_9, %c0_10] : memref<1x1x8x8xf32, #tpu.memory_space<vmem>>, vector<1x1x8x8xf32>
    %7 = vector.shape_cast %6 : vector<1x1x8x8xf32> to vector<8x8xf32>
    %cst_11 = arith.constant dense<0.000000e+00> : vector<8x8xf32>
    %8 = tpu.matmul %3, %5, %cst_11 {dimension_numbers = #tpu.dot_dimension_numbers<[1], [1], [0], [0], [0, 0, 1, 0], [], []>} : vector<8x8xf32>, vector<8x8xf32>, vector<8x8xf32> -> vector<8x8xf32>
    %c0_12 = arith.constant 0 : index
    %c0_13 = arith.constant 0 : index
    %9 = vector.load %arg5[%c0_12, %c0_13] : memref<8x8xf32, #tpu.memory_space<vmem>>, vector<8x8xf32>
    %10 = arith.addf %8, %9 : vector<8x8xf32>
    %c0_14 = arith.constant 0 : index
    %c0_15 = arith.constant 0 : index
    %c0_16 = arith.constant 0 : index
    %11 = vector.load %arg6[%c0_14, %c0_15, %c0_16] : memref<1x1x8xf32, #tpu.memory_space<vmem>>, vector<1x1x8xf32>
    %12 = vector.shape_cast %11 : vector<1x1x8xf32> to vector<1x8xf32>
    %13 = vector.broadcast %12 : vector<1x8xf32> to vector<8x8xf32>
    %14 = arith.addf %10, %13 : vector<8x8xf32>
    %cst_17 = arith.constant dense<0xFF800000> : vector<8xf32>
    %15 = vector.multi_reduction <maximumf>, %14, %cst_17 [1] : vector<8x8xf32> to vector<8xf32>
    %16 = vector.shape_cast %15 : vector<8xf32> to vector<8x1xf32>
    %17 = vector.broadcast %16 : vector<8x1xf32> to vector<8x8xf32>
    %18 = arith.subf %14, %17 : vector<8x8xf32>
    %19 = math.exp %18 : vector<8x8xf32>
    %cst_18 = arith.constant dense<0.000000e+00> : vector<8xf32>
    %20 = vector.multi_reduction <add>, %19, %cst_18 [1] : vector<8x8xf32> to vector<8xf32>
    %21 = vector.shape_cast %20 : vector<8xf32> to vector<8x1xf32>
    %22 = tpu.reciprocal %21 {approx = true} : vector<8x1xf32> -> vector<8x1xf32>
    %cst_19 = arith.constant dense<0.000000e+00> : vector<8x8xf32>
    %23 = tpu.matmul %19, %7, %cst_19 {dimension_numbers = #tpu.dot_dimension_numbers<[1], [0], [0], [1], [0, 0, 1, 1], [], []>} : vector<8x8xf32>, vector<8x8xf32>, vector<8x8xf32> -> vector<8x8xf32>
    %24 = vector.broadcast %22 : vector<8x1xf32> to vector<8x8xf32>
    %25 = arith.mulf %23, %24 : vector<8x8xf32>
    %c0_20 = arith.constant 0 : index
    %c0_21 = arith.constant 0 : index
    %c0_22 = arith.constant 0 : index
    %c0_23 = arith.constant 0 : index
    %26 = vector.load %arg7[%c0_20, %c0_21, %c0_22, %c0_23] : memref<1x1x8x8xf32, #tpu.memory_space<vmem>>, vector<1x1x8x8xf32>
    %27 = vector.shape_cast %26 : vector<1x1x8x8xf32> to vector<8x8xf32>
    %28 = vector.shape_cast %25 : vector<8x8xf32> to vector<1x1x8x8xf32>
    tpu.vector_store %arg7[%c0_20, %c0_21, %c0_22, %c0_23], %28 {strides = array<i32>} : memref<1x1x8x8xf32, #tpu.memory_space<vmem>>, vector<1x1x8x8xf32>,
    return
  }
  func.func @transform_0(%arg0: i32, %arg1: i32) -> (i32, i32, i32, i32) {
    %c0_i32 = arith.constant 0 : i32
    %c0_i32_0 = arith.constant 0 : i32
    %c0_i32_1 = arith.constant 0 : i32
    return %arg0, %arg1, %c0_i32, %c0_i32_0 : i32, i32, i32, i32
  }
  func.func @transform_1(%arg0: i32, %arg1: i32) -> (i32, i32, i32, i32) {
    %c0_i32 = arith.constant 0 : i32
    %c0_i32_0 = arith.constant 0 : i32
    %c0_i32_1 = arith.constant 0 : i32
    return %arg0, %arg1, %c0_i32, %c0_i32_0 : i32, i32, i32, i32
  }
  func.func @transform_2(%arg0: i32, %arg1: i32) -> (i32, i32, i32, i32) {
    %c0_i32 = arith.constant 0 : i32
    %c0_i32_0 = arith.constant 0 : i32
    %c0_i32_1 = arith.constant 0 : i32
    return %arg0, %arg1, %c0_i32, %c0_i32_0 : i32, i32, i32, i32
  }
  func.func @transform_3(%arg0: i32, %arg1: i32) -> (i32, i32) {
    %c0_i32 = arith.constant 0 : i32
    %c0_i32_0 = arith.constant 0 : i32
    %c0_i32_1 = arith.constant 0 : i32
    return %c0_i32, %c0_i32_0 : i32, i32
  }
  func.func @transform_4(%arg0: i32, %arg1: i32) -> (i32, i32, i32) {
    %c0_i32 = arith.constant 0 : i32
    %c0_i32_0 = arith.constant 0 : i32
    %c0_i32_1 = arith.constant 0 : i32
    return %arg0, %c0_i32, %c0_i32_0 : i32, i32, i32
  }
  func.func @transform_5(%arg0: i32, %arg1: i32) -> (i32, i32, i32, i32) {
    %c0_i32 = arith.constant 0 : i32
    %c0_i32_0 = arith.constant 0 : i32
    %c0_i32_1 = arith.constant 0 : i32
    return %arg0, %arg1, %c0_i32, %c0_i32_0 : i32, i32, i32, i32
  }
}

module attributes {stable_mosaic.version = 11 : i64} {
  func.func @_proj_res_ln_kernel(%arg0: i32, %arg1: memref<16x32xf32, #tpu.memory_space<vmem>>, %arg2: memref<32x32xf32, #tpu.memory_space<vmem>>, %arg3: memref<1x32xf32, #tpu.memory_space<vmem>>, %arg4: memref<16x32xf32, #tpu.memory_space<vmem>>, %arg5: memref<1x32xf32, #tpu.memory_space<vmem>>, %arg6: memref<1x32xf32, #tpu.memory_space<vmem>>, %arg7: memref<16x32xf32, #tpu.memory_space<vmem>>) attributes {dimension_semantics = [#tpu.dimension_semantics<parallel>], iteration_bounds = array<i64: 1>, scalar_prefetch = 0 : i64, scratch_operands = 0 : i64, tpu.core_type = #tpu.core_type<tc>, window_params = [{transform_indices = @transform_0, window_bounds = array<i64: 16, 32>}, {pipeline_mode = #tpu.pipeline_mode<synchronous>, transform_indices = @transform_1, window_bounds = array<i64: 32, 32>}, {pipeline_mode = #tpu.pipeline_mode<synchronous>, transform_indices = @transform_2, window_bounds = array<i64: 1, 32>}, {transform_indices = @transform_3, window_bounds = array<i64: 16, 32>}, {pipeline_mode = #tpu.pipeline_mode<synchronous>, transform_indices = @transform_4, window_bounds = array<i64: 1, 32>}, {pipeline_mode = #tpu.pipeline_mode<synchronous>, transform_indices = @transform_5, window_bounds = array<i64: 1, 32>}, {transform_indices = @transform_6, window_bounds = array<i64: 16, 32>}]} {
    %c0 = arith.constant 0 : index
    %c0_0 = arith.constant 0 : index
    %0 = vector.load %arg1[%c0, %c0_0] : memref<16x32xf32, #tpu.memory_space<vmem>>, vector<16x32xf32>
    %c0_1 = arith.constant 0 : index
    %c0_2 = arith.constant 0 : index
    %1 = vector.load %arg2[%c0_1, %c0_2] : memref<32x32xf32, #tpu.memory_space<vmem>>, vector<32x32xf32>
    %cst = arith.constant dense<0.000000e+00> : vector<16x32xf32>
    %2 = tpu.matmul %0, %1, %cst {dimension_numbers = #tpu.dot_dimension_numbers<[1], [0], [0], [1], [0, 0, 1, 1], [], []>} : vector<16x32xf32>, vector<32x32xf32>, vector<16x32xf32> -> vector<16x32xf32>
    %c0_3 = arith.constant 0 : index
    %c0_4 = arith.constant 0 : index
    %3 = vector.load %arg3[%c0_3, %c0_4] : memref<1x32xf32, #tpu.memory_space<vmem>>, vector<1x32xf32>
    %4 = vector.broadcast %3 : vector<1x32xf32> to vector<16x32xf32>
    %5 = arith.addf %2, %4 : vector<16x32xf32>
    %c0_5 = arith.constant 0 : index
    %c0_6 = arith.constant 0 : index
    %6 = vector.load %arg4[%c0_5, %c0_6] : memref<16x32xf32, #tpu.memory_space<vmem>>, vector<16x32xf32>
    %7 = arith.addf %6, %5 : vector<16x32xf32>
    %c0_7 = arith.constant 0 : index
    %c0_8 = arith.constant 0 : index
    %8 = vector.load %arg5[%c0_7, %c0_8] : memref<1x32xf32, #tpu.memory_space<vmem>>, vector<1x32xf32>
    %c0_9 = arith.constant 0 : index
    %c0_10 = arith.constant 0 : index
    %9 = vector.load %arg6[%c0_9, %c0_10] : memref<1x32xf32, #tpu.memory_space<vmem>>, vector<1x32xf32>
    %cst_11 = arith.constant dense<0.000000e+00> : vector<16xf32>
    %10 = vector.multi_reduction <add>, %7, %cst_11 [1] : vector<16x32xf32> to vector<16xf32>
    %11 = vector.shape_cast %10 : vector<16xf32> to vector<16x1xf32>
    %cst_12 = arith.constant 3.200000e+01 : f32
    %12 = vector.broadcast %cst_12 : f32 to vector<16x1xf32>
    %13 = arith.divf %11, %12 : vector<16x1xf32>
    %14 = vector.broadcast %13 : vector<16x1xf32> to vector<16x32xf32>
    %15 = arith.subf %7, %14 : vector<16x32xf32>
    %16 = arith.mulf %15, %15 : vector<16x32xf32>
    %cst_13 = arith.constant dense<0.000000e+00> : vector<16xf32>
    %17 = vector.multi_reduction <add>, %16, %cst_13 [1] : vector<16x32xf32> to vector<16xf32>
    %18 = vector.shape_cast %17 : vector<16xf32> to vector<16x1xf32>
    %cst_14 = arith.constant 3.200000e+01 : f32
    %19 = vector.broadcast %cst_14 : f32 to vector<16x1xf32>
    %20 = arith.divf %18, %19 : vector<16x1xf32>
    %cst_15 = arith.constant 9.99999974E-6 : f32
    %21 = vector.broadcast %cst_15 : f32 to vector<16x1xf32>
    %22 = arith.addf %20, %21 : vector<16x1xf32>
    %23 = math.rsqrt %22 : vector<16x1xf32>
    %24 = vector.broadcast %23 : vector<16x1xf32> to vector<16x32xf32>
    %25 = arith.mulf %15, %24 : vector<16x32xf32>
    %26 = vector.broadcast %8 : vector<1x32xf32> to vector<16x32xf32>
    %27 = arith.mulf %25, %26 : vector<16x32xf32>
    %28 = vector.broadcast %9 : vector<1x32xf32> to vector<16x32xf32>
    %29 = arith.addf %27, %28 : vector<16x32xf32>
    %c0_16 = arith.constant 0 : index
    %c0_17 = arith.constant 0 : index
    %30 = vector.load %arg7[%c0_16, %c0_17] : memref<16x32xf32, #tpu.memory_space<vmem>>, vector<16x32xf32>
    tpu.vector_store %arg7[%c0_16, %c0_17], %29 {strides = array<i32>} : memref<16x32xf32, #tpu.memory_space<vmem>>, vector<16x32xf32>,
    return
  }
  func.func @transform_0(%arg0: i32) -> (i32, i32) {
    %c0_i32 = arith.constant 0 : i32
    %c0_i32_0 = arith.constant 0 : i32
    return %arg0, %c0_i32 : i32, i32
  }
  func.func @transform_1(%arg0: i32) -> (i32, i32) {
    %c0_i32 = arith.constant 0 : i32
    %c0_i32_0 = arith.constant 0 : i32
    %c0_i32_1 = arith.constant 0 : i32
    return %c0_i32, %c0_i32_0 : i32, i32
  }
  func.func @transform_2(%arg0: i32) -> (i32, i32) {
    %c0_i32 = arith.constant 0 : i32
    %c0_i32_0 = arith.constant 0 : i32
    %c0_i32_1 = arith.constant 0 : i32
    return %c0_i32, %c0_i32_0 : i32, i32
  }
  func.func @transform_3(%arg0: i32) -> (i32, i32) {
    %c0_i32 = arith.constant 0 : i32
    %c0_i32_0 = arith.constant 0 : i32
    return %arg0, %c0_i32 : i32, i32
  }
  func.func @transform_4(%arg0: i32) -> (i32, i32) {
    %c0_i32 = arith.constant 0 : i32
    %c0_i32_0 = arith.constant 0 : i32
    %c0_i32_1 = arith.constant 0 : i32
    return %c0_i32, %c0_i32_0 : i32, i32
  }
  func.func @transform_5(%arg0: i32) -> (i32, i32) {
    %c0_i32 = arith.constant 0 : i32
    %c0_i32_0 = arith.constant 0 : i32
    %c0_i32_1 = arith.constant 0 : i32
    return %c0_i32, %c0_i32_0 : i32, i32
  }
  func.func @transform_6(%arg0: i32) -> (i32, i32) {
    %c0_i32 = arith.constant 0 : i32
    %c0_i32_0 = arith.constant 0 : i32
    return %arg0, %c0_i32 : i32, i32
  }
}

module attributes {stable_mosaic.version = 11 : i64} {
  func.func @_ffn_res_ln_kernel(%arg0: i32, %arg1: memref<16x32xf32, #tpu.memory_space<vmem>>, %arg2: memref<32x64xf32, #tpu.memory_space<vmem>>, %arg3: memref<1x64xf32, #tpu.memory_space<vmem>>, %arg4: memref<64x32xf32, #tpu.memory_space<vmem>>, %arg5: memref<1x32xf32, #tpu.memory_space<vmem>>, %arg6: memref<1x32xf32, #tpu.memory_space<vmem>>, %arg7: memref<1x32xf32, #tpu.memory_space<vmem>>, %arg8: memref<16x32xf32, #tpu.memory_space<vmem>>) attributes {dimension_semantics = [#tpu.dimension_semantics<parallel>], iteration_bounds = array<i64: 1>, scalar_prefetch = 0 : i64, scratch_operands = 0 : i64, tpu.core_type = #tpu.core_type<tc>, window_params = [{transform_indices = @transform_0, window_bounds = array<i64: 16, 32>}, {pipeline_mode = #tpu.pipeline_mode<synchronous>, transform_indices = @transform_1, window_bounds = array<i64: 32, 64>}, {pipeline_mode = #tpu.pipeline_mode<synchronous>, transform_indices = @transform_2, window_bounds = array<i64: 1, 64>}, {pipeline_mode = #tpu.pipeline_mode<synchronous>, transform_indices = @transform_3, window_bounds = array<i64: 64, 32>}, {pipeline_mode = #tpu.pipeline_mode<synchronous>, transform_indices = @transform_4, window_bounds = array<i64: 1, 32>}, {pipeline_mode = #tpu.pipeline_mode<synchronous>, transform_indices = @transform_5, window_bounds = array<i64: 1, 32>}, {pipeline_mode = #tpu.pipeline_mode<synchronous>, transform_indices = @transform_6, window_bounds = array<i64: 1, 32>}, {transform_indices = @transform_7, window_bounds = array<i64: 16, 32>}]} {
    %c0 = arith.constant 0 : index
    %c0_0 = arith.constant 0 : index
    %0 = vector.load %arg1[%c0, %c0_0] : memref<16x32xf32, #tpu.memory_space<vmem>>, vector<16x32xf32>
    %c0_1 = arith.constant 0 : index
    %c0_2 = arith.constant 0 : index
    %1 = vector.load %arg2[%c0_1, %c0_2] : memref<32x64xf32, #tpu.memory_space<vmem>>, vector<32x64xf32>
    %cst = arith.constant dense<0.000000e+00> : vector<16x64xf32>
    %2 = tpu.matmul %0, %1, %cst {dimension_numbers = #tpu.dot_dimension_numbers<[1], [0], [0], [1], [0, 0, 1, 1], [], []>} : vector<16x32xf32>, vector<32x64xf32>, vector<16x64xf32> -> vector<16x64xf32>
    %c0_3 = arith.constant 0 : index
    %c0_4 = arith.constant 0 : index
    %3 = vector.load %arg3[%c0_3, %c0_4] : memref<1x64xf32, #tpu.memory_space<vmem>>, vector<1x64xf32>
    %4 = vector.broadcast %3 : vector<1x64xf32> to vector<16x64xf32>
    %5 = arith.addf %2, %4 : vector<16x64xf32>
    %cst_5 = arith.constant 0.000000e+00 : f32
    %6 = vector.broadcast %cst_5 : f32 to vector<16x64xf32>
    %7 = arith.maximumf %5, %6 : vector<16x64xf32>
    %c0_6 = arith.constant 0 : index
    %c0_7 = arith.constant 0 : index
    %8 = vector.load %arg4[%c0_6, %c0_7] : memref<64x32xf32, #tpu.memory_space<vmem>>, vector<64x32xf32>
    %cst_8 = arith.constant dense<0.000000e+00> : vector<16x32xf32>
    %9 = tpu.matmul %7, %8, %cst_8 {dimension_numbers = #tpu.dot_dimension_numbers<[1], [0], [0], [1], [0, 0, 1, 1], [], []>} : vector<16x64xf32>, vector<64x32xf32>, vector<16x32xf32> -> vector<16x32xf32>
    %c0_9 = arith.constant 0 : index
    %c0_10 = arith.constant 0 : index
    %10 = vector.load %arg5[%c0_9, %c0_10] : memref<1x32xf32, #tpu.memory_space<vmem>>, vector<1x32xf32>
    %11 = vector.broadcast %10 : vector<1x32xf32> to vector<16x32xf32>
    %12 = arith.addf %9, %11 : vector<16x32xf32>
    %13 = arith.addf %0, %12 : vector<16x32xf32>
    %c0_11 = arith.constant 0 : index
    %c0_12 = arith.constant 0 : index
    %14 = vector.load %arg6[%c0_11, %c0_12] : memref<1x32xf32, #tpu.memory_space<vmem>>, vector<1x32xf32>
    %c0_13 = arith.constant 0 : index
    %c0_14 = arith.constant 0 : index
    %15 = vector.load %arg7[%c0_13, %c0_14] : memref<1x32xf32, #tpu.memory_space<vmem>>, vector<1x32xf32>
    %cst_15 = arith.constant dense<0.000000e+00> : vector<16xf32>
    %16 = vector.multi_reduction <add>, %13, %cst_15 [1] : vector<16x32xf32> to vector<16xf32>
    %17 = vector.shape_cast %16 : vector<16xf32> to vector<16x1xf32>
    %cst_16 = arith.constant 3.200000e+01 : f32
    %18 = vector.broadcast %cst_16 : f32 to vector<16x1xf32>
    %19 = arith.divf %17, %18 : vector<16x1xf32>
    %20 = vector.broadcast %19 : vector<16x1xf32> to vector<16x32xf32>
    %21 = arith.subf %13, %20 : vector<16x32xf32>
    %22 = arith.mulf %21, %21 : vector<16x32xf32>
    %cst_17 = arith.constant dense<0.000000e+00> : vector<16xf32>
    %23 = vector.multi_reduction <add>, %22, %cst_17 [1] : vector<16x32xf32> to vector<16xf32>
    %24 = vector.shape_cast %23 : vector<16xf32> to vector<16x1xf32>
    %cst_18 = arith.constant 3.200000e+01 : f32
    %25 = vector.broadcast %cst_18 : f32 to vector<16x1xf32>
    %26 = arith.divf %24, %25 : vector<16x1xf32>
    %cst_19 = arith.constant 9.99999974E-6 : f32
    %27 = vector.broadcast %cst_19 : f32 to vector<16x1xf32>
    %28 = arith.addf %26, %27 : vector<16x1xf32>
    %29 = math.rsqrt %28 : vector<16x1xf32>
    %30 = vector.broadcast %29 : vector<16x1xf32> to vector<16x32xf32>
    %31 = arith.mulf %21, %30 : vector<16x32xf32>
    %32 = vector.broadcast %14 : vector<1x32xf32> to vector<16x32xf32>
    %33 = arith.mulf %31, %32 : vector<16x32xf32>
    %34 = vector.broadcast %15 : vector<1x32xf32> to vector<16x32xf32>
    %35 = arith.addf %33, %34 : vector<16x32xf32>
    %c0_20 = arith.constant 0 : index
    %c0_21 = arith.constant 0 : index
    %36 = vector.load %arg8[%c0_20, %c0_21] : memref<16x32xf32, #tpu.memory_space<vmem>>, vector<16x32xf32>
    tpu.vector_store %arg8[%c0_20, %c0_21], %35 {strides = array<i32>} : memref<16x32xf32, #tpu.memory_space<vmem>>, vector<16x32xf32>,
    return
  }
  func.func @transform_0(%arg0: i32) -> (i32, i32) {
    %c0_i32 = arith.constant 0 : i32
    %c0_i32_0 = arith.constant 0 : i32
    return %arg0, %c0_i32 : i32, i32
  }
  func.func @transform_1(%arg0: i32) -> (i32, i32) {
    %c0_i32 = arith.constant 0 : i32
    %c0_i32_0 = arith.constant 0 : i32
    %c0_i32_1 = arith.constant 0 : i32
    return %c0_i32, %c0_i32_0 : i32, i32
  }
  func.func @transform_2(%arg0: i32) -> (i32, i32) {
    %c0_i32 = arith.constant 0 : i32
    %c0_i32_0 = arith.constant 0 : i32
    %c0_i32_1 = arith.constant 0 : i32
    return %c0_i32, %c0_i32_0 : i32, i32
  }
  func.func @transform_3(%arg0: i32) -> (i32, i32) {
    %c0_i32 = arith.constant 0 : i32
    %c0_i32_0 = arith.constant 0 : i32
    %c0_i32_1 = arith.constant 0 : i32
    return %c0_i32, %c0_i32_0 : i32, i32
  }
  func.func @transform_4(%arg0: i32) -> (i32, i32) {
    %c0_i32 = arith.constant 0 : i32
    %c0_i32_0 = arith.constant 0 : i32
    %c0_i32_1 = arith.constant 0 : i32
    return %c0_i32, %c0_i32_0 : i32, i32
  }
  func.func @transform_5(%arg0: i32) -> (i32, i32) {
    %c0_i32 = arith.constant 0 : i32
    %c0_i32_0 = arith.constant 0 : i32
    %c0_i32_1 = arith.constant 0 : i32
    return %c0_i32, %c0_i32_0 : i32, i32
  }
  func.func @transform_6(%arg0: i32) -> (i32, i32) {
    %c0_i32 = arith.constant 0 : i32
    %c0_i32_0 = arith.constant 0 : i32
    %c0_i32_1 = arith.constant 0 : i32
    return %c0_i32, %c0_i32_0 : i32, i32
  }
  func.func @transform_7(%arg0: i32) -> (i32, i32) {
    %c0_i32 = arith.constant 0 : i32
    %c0_i32_0 = arith.constant 0 : i32
    return %arg0, %c0_i32 : i32, i32
  }
}

module attributes {stable_mosaic.version = 11 : i64} {
  func.func @_ln_kernel(%arg0: i32, %arg1: memref<16x32xf32, #tpu.memory_space<vmem>>, %arg2: memref<1x32xf32, #tpu.memory_space<vmem>>, %arg3: memref<1x32xf32, #tpu.memory_space<vmem>>, %arg4: memref<16x32xf32, #tpu.memory_space<vmem>>) attributes {dimension_semantics = [#tpu.dimension_semantics<parallel>], iteration_bounds = array<i64: 1>, scalar_prefetch = 0 : i64, scratch_operands = 0 : i64, tpu.core_type = #tpu.core_type<tc>, window_params = [{transform_indices = @transform_0, window_bounds = array<i64: 16, 32>}, {pipeline_mode = #tpu.pipeline_mode<synchronous>, transform_indices = @transform_1, window_bounds = array<i64: 1, 32>}, {pipeline_mode = #tpu.pipeline_mode<synchronous>, transform_indices = @transform_2, window_bounds = array<i64: 1, 32>}, {transform_indices = @transform_3, window_bounds = array<i64: 16, 32>}]} {
    %c0 = arith.constant 0 : index
    %c0_0 = arith.constant 0 : index
    %0 = vector.load %arg1[%c0, %c0_0] : memref<16x32xf32, #tpu.memory_space<vmem>>, vector<16x32xf32>
    %c0_1 = arith.constant 0 : index
    %c0_2 = arith.constant 0 : index
    %1 = vector.load %arg2[%c0_1, %c0_2] : memref<1x32xf32, #tpu.memory_space<vmem>>, vector<1x32xf32>
    %c0_3 = arith.constant 0 : index
    %c0_4 = arith.constant 0 : index
    %2 = vector.load %arg3[%c0_3, %c0_4] : memref<1x32xf32, #tpu.memory_space<vmem>>, vector<1x32xf32>
    %cst = arith.constant dense<0.000000e+00> : vector<16xf32>
    %3 = vector.multi_reduction <add>, %0, %cst [1] : vector<16x32xf32> to vector<16xf32>
    %4 = vector.shape_cast %3 : vector<16xf32> to vector<16x1xf32>
    %cst_5 = arith.constant 3.200000e+01 : f32
    %5 = vector.broadcast %cst_5 : f32 to vector<16x1xf32>
    %6 = arith.divf %4, %5 : vector<16x1xf32>
    %7 = vector.broadcast %6 : vector<16x1xf32> to vector<16x32xf32>
    %8 = arith.subf %0, %7 : vector<16x32xf32>
    %9 = arith.mulf %8, %8 : vector<16x32xf32>
    %cst_6 = arith.constant dense<0.000000e+00> : vector<16xf32>
    %10 = vector.multi_reduction <add>, %9, %cst_6 [1] : vector<16x32xf32> to vector<16xf32>
    %11 = vector.shape_cast %10 : vector<16xf32> to vector<16x1xf32>
    %cst_7 = arith.constant 3.200000e+01 : f32
    %12 = vector.broadcast %cst_7 : f32 to vector<16x1xf32>
    %13 = arith.divf %11, %12 : vector<16x1xf32>
    %cst_8 = arith.constant 9.99999974E-6 : f32
    %14 = vector.broadcast %cst_8 : f32 to vector<16x1xf32>
    %15 = arith.addf %13, %14 : vector<16x1xf32>
    %16 = math.rsqrt %15 : vector<16x1xf32>
    %17 = vector.broadcast %16 : vector<16x1xf32> to vector<16x32xf32>
    %18 = arith.mulf %8, %17 : vector<16x32xf32>
    %19 = vector.broadcast %1 : vector<1x32xf32> to vector<16x32xf32>
    %20 = arith.mulf %18, %19 : vector<16x32xf32>
    %21 = vector.broadcast %2 : vector<1x32xf32> to vector<16x32xf32>
    %22 = arith.addf %20, %21 : vector<16x32xf32>
    %c0_9 = arith.constant 0 : index
    %c0_10 = arith.constant 0 : index
    %23 = vector.load %arg4[%c0_9, %c0_10] : memref<16x32xf32, #tpu.memory_space<vmem>>, vector<16x32xf32>
    tpu.vector_store %arg4[%c0_9, %c0_10], %22 {strides = array<i32>} : memref<16x32xf32, #tpu.memory_space<vmem>>, vector<16x32xf32>,
    return
  }
  func.func @transform_0(%arg0: i32) -> (i32, i32) {
    %c0_i32 = arith.constant 0 : i32
    %c0_i32_0 = arith.constant 0 : i32
    return %arg0, %c0_i32 : i32, i32
  }
  func.func @transform_1(%arg0: i32) -> (i32, i32) {
    %c0_i32 = arith.constant 0 : i32
    %c0_i32_0 = arith.constant 0 : i32
    %c0_i32_1 = arith.constant 0 : i32
    return %c0_i32, %c0_i32_0 : i32, i32
  }
  func.func @transform_2(%arg0: i32) -> (i32, i32) {
    %c0_i32 = arith.constant 0 : i32
    %c0_i32_0 = arith.constant 0 : i32
    %c0_i32_1 = arith.constant 0 : i32
    return %c0_i32, %c0_i32_0 : i32, i32
  }
  func.func @transform_3(%arg0: i32) -> (i32, i32) {
    %c0_i32 = arith.constant 0 : i32
    %c0_i32_0 = arith.constant 0 : i32
    return %arg0, %c0_i32 : i32, i32
  }
}

module attributes {stable_mosaic.version = 11 : i64} {
  func.func @_attn_kernel(%arg0: i32, %arg1: i32, %arg2: memref<1x1x6x8xf32, #tpu.memory_space<vmem>>, %arg3: memref<1x1x6x8xf32, #tpu.memory_space<vmem>>, %arg4: memref<1x1x6x8xf32, #tpu.memory_space<vmem>>, %arg5: memref<6x6xf32, #tpu.memory_space<vmem>>, %arg6: memref<1x1x6xf32, #tpu.memory_space<vmem>>, %arg7: memref<1x1x6x8xf32, #tpu.memory_space<vmem>>) attributes {dimension_semantics = [#tpu.dimension_semantics<parallel>, #tpu.dimension_semantics<parallel>], iteration_bounds = array<i64: 2, 4>, scalar_prefetch = 0 : i64, scratch_operands = 0 : i64, tpu.core_type = #tpu.core_type<tc>, window_params = [{transform_indices = @transform_0, window_bounds = array<i64: 1, 1, 6, 8>}, {transform_indices = @transform_1, window_bounds = array<i64: 1, 1, 6, 8>}, {transform_indices = @transform_2, window_bounds = array<i64: 1, 1, 6, 8>}, {pipeline_mode = #tpu.pipeline_mode<synchronous>, transform_indices = @transform_3, window_bounds = array<i64: 6, 6>}, {transform_indices = @transform_4, window_bounds = array<i64: 1, 1, 6>}, {transform_indices = @transform_5, window_bounds = array<i64: 1, 1, 6, 8>}]} {
    %c0 = arith.constant 0 : index
    %c0_0 = arith.constant 0 : index
    %c0_1 = arith.constant 0 : index
    %c0_2 = arith.constant 0 : index
    %0 = vector.load %arg2[%c0, %c0_0, %c0_1, %c0_2] : memref<1x1x6x8xf32, #tpu.memory_space<vmem>>, vector<1x1x6x8xf32>
    %1 = vector.shape_cast %0 : vector<1x1x6x8xf32> to vector<6x8xf32>
    %cst = arith.constant 0.353553385 : f32
    %2 = vector.broadcast %cst : f32 to vector<6x8xf32>
    %3 = arith.mulf %1, %2 : vector<6x8xf32>
    %c0_3 = arith.constant 0 : index
    %c0_4 = arith.constant 0 : index
    %c0_5 = arith.constant 0 : index
    %c0_6 = arith.constant 0 : index
    %4 = vector.load %arg3[%c0_3, %c0_4, %c0_5, %c0_6] : memref<1x1x6x8xf32, #tpu.memory_space<vmem>>, vector<1x1x6x8xf32>
    %5 = vector.shape_cast %4 : vector<1x1x6x8xf32> to vector<6x8xf32>
    %c0_7 = arith.constant 0 : index
    %c0_8 = arith.constant 0 : index
    %c0_9 = arith.constant 0 : index
    %c0_10 = arith.constant 0 : index
    %6 = vector.load %arg4[%c0_7, %c0_8, %c0_9, %c0_10] : memref<1x1x6x8xf32, #tpu.memory_space<vmem>>, vector<1x1x6x8xf32>
    %7 = vector.shape_cast %6 : vector<1x1x6x8xf32> to vector<6x8xf32>
    %cst_11 = arith.constant dense<0.000000e+00> : vector<6x6xf32>
    %8 = tpu.matmul %3, %5, %cst_11 {dimension_numbers = #tpu.dot_dimension_numbers<[1], [1], [0], [0], [0, 0, 1, 0], [], []>} : vector<6x8xf32>, vector<6x8xf32>, vector<6x6xf32> -> vector<6x6xf32>
    %c0_12 = arith.constant 0 : index
    %c0_13 = arith.constant 0 : index
    %9 = vector.load %arg5[%c0_12, %c0_13] : memref<6x6xf32, #tpu.memory_space<vmem>>, vector<6x6xf32>
    %10 = arith.addf %8, %9 : vector<6x6xf32>
    %c0_14 = arith.constant 0 : index
    %c0_15 = arith.constant 0 : index
    %c0_16 = arith.constant 0 : index
    %11 = vector.load %arg6[%c0_14, %c0_15, %c0_16] : memref<1x1x6xf32, #tpu.memory_space<vmem>>, vector<1x1x6xf32>
    %12 = vector.shape_cast %11 : vector<1x1x6xf32> to vector<1x6xf32>
    %13 = vector.broadcast %12 : vector<1x6xf32> to vector<6x6xf32>
    %14 = arith.addf %10, %13 : vector<6x6xf32>
    %cst_17 = arith.constant dense<0xFF800000> : vector<6xf32>
    %15 = vector.multi_reduction <maximumf>, %14, %cst_17 [1] : vector<6x6xf32> to vector<6xf32>
    %16 = vector.shape_cast %15 : vector<6xf32> to vector<6x1xf32>
    %17 = vector.broadcast %16 : vector<6x1xf32> to vector<6x6xf32>
    %18 = arith.subf %14, %17 : vector<6x6xf32>
    %19 = math.exp %18 : vector<6x6xf32>
    %cst_18 = arith.constant dense<0.000000e+00> : vector<6xf32>
    %20 = vector.multi_reduction <add>, %19, %cst_18 [1] : vector<6x6xf32> to vector<6xf32>
    %21 = vector.shape_cast %20 : vector<6xf32> to vector<6x1xf32>
    %22 = tpu.reciprocal %21 {approx = true} : vector<6x1xf32> -> vector<6x1xf32>
    %cst_19 = arith.constant dense<0.000000e+00> : vector<6x8xf32>
    %23 = tpu.matmul %19, %7, %cst_19 {dimension_numbers = #tpu.dot_dimension_numbers<[1], [0], [0], [1], [0, 0, 1, 1], [], []>} : vector<6x6xf32>, vector<6x8xf32>, vector<6x8xf32> -> vector<6x8xf32>
    %24 = vector.broadcast %22 : vector<6x1xf32> to vector<6x8xf32>
    %25 = arith.mulf %23, %24 : vector<6x8xf32>
    %c0_20 = arith.constant 0 : index
    %c0_21 = arith.constant 0 : index
    %c0_22 = arith.constant 0 : index
    %c0_23 = arith.constant 0 : index
    %26 = vector.load %arg7[%c0_20, %c0_21, %c0_22, %c0_23] : memref<1x1x6x8xf32, #tpu.memory_space<vmem>>, vector<1x1x6x8xf32>
    %27 = vector.shape_cast %26 : vector<1x1x6x8xf32> to vector<6x8xf32>
    %28 = vector.shape_cast %25 : vector<6x8xf32> to vector<1x1x6x8xf32>
    tpu.vector_store %arg7[%c0_20, %c0_21, %c0_22, %c0_23], %28 {strides = array<i32>} : memref<1x1x6x8xf32, #tpu.memory_space<vmem>>, vector<1x1x6x8xf32>,
    return
  }
  func.func @transform_0(%arg0: i32, %arg1: i32) -> (i32, i32, i32, i32) {
    %c0_i32 = arith.constant 0 : i32
    %c0_i32_0 = arith.constant 0 : i32
    %c0_i32_1 = arith.constant 0 : i32
    return %arg0, %arg1, %c0_i32, %c0_i32_0 : i32, i32, i32, i32
  }
  func.func @transform_1(%arg0: i32, %arg1: i32) -> (i32, i32, i32, i32) {
    %c0_i32 = arith.constant 0 : i32
    %c0_i32_0 = arith.constant 0 : i32
    %c0_i32_1 = arith.constant 0 : i32
    return %arg0, %arg1, %c0_i32, %c0_i32_0 : i32, i32, i32, i32
  }
  func.func @transform_2(%arg0: i32, %arg1: i32) -> (i32, i32, i32, i32) {
    %c0_i32 = arith.constant 0 : i32
    %c0_i32_0 = arith.constant 0 : i32
    %c0_i32_1 = arith.constant 0 : i32
    return %arg0, %arg1, %c0_i32, %c0_i32_0 : i32, i32, i32, i32
  }
  func.func @transform_3(%arg0: i32, %arg1: i32) -> (i32, i32) {
    %c0_i32 = arith.constant 0 : i32
    %c0_i32_0 = arith.constant 0 : i32
    %c0_i32_1 = arith.constant 0 : i32
    return %c0_i32, %c0_i32_0 : i32, i32
  }
  func.func @transform_4(%arg0: i32, %arg1: i32) -> (i32, i32, i32) {
    %c0_i32 = arith.constant 0 : i32
    %c0_i32_0 = arith.constant 0 : i32
    %c0_i32_1 = arith.constant 0 : i32
    return %arg0, %c0_i32, %c0_i32_0 : i32, i32, i32
  }
  func.func @transform_5(%arg0: i32, %arg1: i32) -> (i32, i32, i32, i32) {
    %c0_i32 = arith.constant 0 : i32
    %c0_i32_0 = arith.constant 0 : i32
    %c0_i32_1 = arith.constant 0 : i32
    return %arg0, %arg1, %c0_i32, %c0_i32_0 : i32, i32, i32, i32
  }
}

module attributes {stable_mosaic.version = 11 : i64} {
  func.func @_attn_kernel(%arg0: i32, %arg1: i32, %arg2: memref<1x1x6x8xf32, #tpu.memory_space<vmem>>, %arg3: memref<1x1x8x8xf32, #tpu.memory_space<vmem>>, %arg4: memref<1x1x8x8xf32, #tpu.memory_space<vmem>>, %arg5: memref<6x8xf32, #tpu.memory_space<vmem>>, %arg6: memref<1x1x8xf32, #tpu.memory_space<vmem>>, %arg7: memref<1x1x6x8xf32, #tpu.memory_space<vmem>>) attributes {dimension_semantics = [#tpu.dimension_semantics<parallel>, #tpu.dimension_semantics<parallel>], iteration_bounds = array<i64: 2, 4>, scalar_prefetch = 0 : i64, scratch_operands = 0 : i64, tpu.core_type = #tpu.core_type<tc>, window_params = [{transform_indices = @transform_0, window_bounds = array<i64: 1, 1, 6, 8>}, {transform_indices = @transform_1, window_bounds = array<i64: 1, 1, 8, 8>}, {transform_indices = @transform_2, window_bounds = array<i64: 1, 1, 8, 8>}, {pipeline_mode = #tpu.pipeline_mode<synchronous>, transform_indices = @transform_3, window_bounds = array<i64: 6, 8>}, {transform_indices = @transform_4, window_bounds = array<i64: 1, 1, 8>}, {transform_indices = @transform_5, window_bounds = array<i64: 1, 1, 6, 8>}]} {
    %c0 = arith.constant 0 : index
    %c0_0 = arith.constant 0 : index
    %c0_1 = arith.constant 0 : index
    %c0_2 = arith.constant 0 : index
    %0 = vector.load %arg2[%c0, %c0_0, %c0_1, %c0_2] : memref<1x1x6x8xf32, #tpu.memory_space<vmem>>, vector<1x1x6x8xf32>
    %1 = vector.shape_cast %0 : vector<1x1x6x8xf32> to vector<6x8xf32>
    %cst = arith.constant 0.353553385 : f32
    %2 = vector.broadcast %cst : f32 to vector<6x8xf32>
    %3 = arith.mulf %1, %2 : vector<6x8xf32>
    %c0_3 = arith.constant 0 : index
    %c0_4 = arith.constant 0 : index
    %c0_5 = arith.constant 0 : index
    %c0_6 = arith.constant 0 : index
    %4 = vector.load %arg3[%c0_3, %c0_4, %c0_5, %c0_6] : memref<1x1x8x8xf32, #tpu.memory_space<vmem>>, vector<1x1x8x8xf32>
    %5 = vector.shape_cast %4 : vector<1x1x8x8xf32> to vector<8x8xf32>
    %c0_7 = arith.constant 0 : index
    %c0_8 = arith.constant 0 : index
    %c0_9 = arith.constant 0 : index
    %c0_10 = arith.constant 0 : index
    %6 = vector.load %arg4[%c0_7, %c0_8, %c0_9, %c0_10] : memref<1x1x8x8xf32, #tpu.memory_space<vmem>>, vector<1x1x8x8xf32>
    %7 = vector.shape_cast %6 : vector<1x1x8x8xf32> to vector<8x8xf32>
    %cst_11 = arith.constant dense<0.000000e+00> : vector<6x8xf32>
    %8 = tpu.matmul %3, %5, %cst_11 {dimension_numbers = #tpu.dot_dimension_numbers<[1], [1], [0], [0], [0, 0, 1, 0], [], []>} : vector<6x8xf32>, vector<8x8xf32>, vector<6x8xf32> -> vector<6x8xf32>
    %c0_12 = arith.constant 0 : index
    %c0_13 = arith.constant 0 : index
    %9 = vector.load %arg5[%c0_12, %c0_13] : memref<6x8xf32, #tpu.memory_space<vmem>>, vector<6x8xf32>
    %10 = arith.addf %8, %9 : vector<6x8xf32>
    %c0_14 = arith.constant 0 : index
    %c0_15 = arith.constant 0 : index
    %c0_16 = arith.constant 0 : index
    %11 = vector.load %arg6[%c0_14, %c0_15, %c0_16] : memref<1x1x8xf32, #tpu.memory_space<vmem>>, vector<1x1x8xf32>
    %12 = vector.shape_cast %11 : vector<1x1x8xf32> to vector<1x8xf32>
    %13 = vector.broadcast %12 : vector<1x8xf32> to vector<6x8xf32>
    %14 = arith.addf %10, %13 : vector<6x8xf32>
    %cst_17 = arith.constant dense<0xFF800000> : vector<6xf32>
    %15 = vector.multi_reduction <maximumf>, %14, %cst_17 [1] : vector<6x8xf32> to vector<6xf32>
    %16 = vector.shape_cast %15 : vector<6xf32> to vector<6x1xf32>
    %17 = vector.broadcast %16 : vector<6x1xf32> to vector<6x8xf32>
    %18 = arith.subf %14, %17 : vector<6x8xf32>
    %19 = math.exp %18 : vector<6x8xf32>
    %cst_18 = arith.constant dense<0.000000e+00> : vector<6xf32>
    %20 = vector.multi_reduction <add>, %19, %cst_18 [1] : vector<6x8xf32> to vector<6xf32>
    %21 = vector.shape_cast %20 : vector<6xf32> to vector<6x1xf32>
    %22 = tpu.reciprocal %21 {approx = true} : vector<6x1xf32> -> vector<6x1xf32>
    %cst_19 = arith.constant dense<0.000000e+00> : vector<6x8xf32>
    %23 = tpu.matmul %19, %7, %cst_19 {dimension_numbers = #tpu.dot_dimension_numbers<[1], [0], [0], [1], [0, 0, 1, 1], [], []>} : vector<6x8xf32>, vector<8x8xf32>, vector<6x8xf32> -> vector<6x8xf32>
    %24 = vector.broadcast %22 : vector<6x1xf32> to vector<6x8xf32>
    %25 = arith.mulf %23, %24 : vector<6x8xf32>
    %c0_20 = arith.constant 0 : index
    %c0_21 = arith.constant 0 : index
    %c0_22 = arith.constant 0 : index
    %c0_23 = arith.constant 0 : index
    %26 = vector.load %arg7[%c0_20, %c0_21, %c0_22, %c0_23] : memref<1x1x6x8xf32, #tpu.memory_space<vmem>>, vector<1x1x6x8xf32>
    %27 = vector.shape_cast %26 : vector<1x1x6x8xf32> to vector<6x8xf32>
    %28 = vector.shape_cast %25 : vector<6x8xf32> to vector<1x1x6x8xf32>
    tpu.vector_store %arg7[%c0_20, %c0_21, %c0_22, %c0_23], %28 {strides = array<i32>} : memref<1x1x6x8xf32, #tpu.memory_space<vmem>>, vector<1x1x6x8xf32>,
    return
  }
  func.func @transform_0(%arg0: i32, %arg1: i32) -> (i32, i32, i32, i32) {
    %c0_i32 = arith.constant 0 : i32
    %c0_i32_0 = arith.constant 0 : i32
    %c0_i32_1 = arith.constant 0 : i32
    return %arg0, %arg1, %c0_i32, %c0_i32_0 : i32, i32, i32, i32
  }
  func.func @transform_1(%arg0: i32, %arg1: i32) -> (i32, i32, i32, i32) {
    %c0_i32 = arith.constant 0 : i32
    %c0_i32_0 = arith.constant 0 : i32
    %c0_i32_1 = arith.constant 0 : i32
    return %arg0, %arg1, %c0_i32, %c0_i32_0 : i32, i32, i32, i32
  }
  func.func @transform_2(%arg0: i32, %arg1: i32) -> (i32, i32, i32, i32) {
    %c0_i32 = arith.constant 0 : i32
    %c0_i32_0 = arith.constant 0 : i32
    %c0_i32_1 = arith.constant 0 : i32
    return %arg0, %arg1, %c0_i32, %c0_i32_0 : i32, i32, i32, i32
  }
  func.func @transform_3(%arg0: i32, %arg1: i32) -> (i32, i32) {
    %c0_i32 = arith.constant 0 : i32
    %c0_i32_0 = arith.constant 0 : i32
    %c0_i32_1 = arith.constant 0 : i32
    return %c0_i32, %c0_i32_0 : i32, i32
  }
  func.func @transform_4(%arg0: i32, %arg1: i32) -> (i32, i32, i32) {
    %c0_i32 = arith.constant 0 : i32
    %c0_i32_0 = arith.constant 0 : i32
    %c0_i32_1 = arith.constant 0 : i32
    return %arg0, %c0_i32, %c0_i32_0 : i32, i32, i32
  }
  func.func @transform_5(%arg0: i32, %arg1: i32) -> (i32, i32, i32, i32) {
    %c0_i32 = arith.constant 0 : i32
    %c0_i32_0 = arith.constant 0 : i32
    %c0_i32_1 = arith.constant 0 : i32
    return %arg0, %arg1, %c0_i32, %c0_i32_0 : i32, i32, i32, i32
  }
}

</mosaic_0001>

<bundles_post_ra>
// kernel: seq2seq_forward.29
= control target key start
LH: loop header
LB: loop body
LE: loop exit
PB: predicated region body
PF: predicated region fallthrough
CT: control target
= control target key end

     0   :  { %vm36_vm0 = vcmask 261120   ;;  %s289_s1 = inlined_call_operand.vmem [shape: f32[32,32], index: 1, kind: input, shape index: {}]   ;;  %s290_s0 = inlined_call_operand.vmem [shape: f32[16,32], index: 0, kind: input, shape index: {}]   ;;  %s291_s2 = inlined_call_operand.vmem [shape: f32[1,32], index: 2, kind: input, shape index: {}]   ;;  %s292_s3 = inlined_call_operand.vmem [shape: f32[16,32], index: 3, kind: input, shape index: {}]   ;;  %s293_s4 = inlined_call_operand.vmem [shape: f32[1,32], index: 4, kind: input, shape index: {}]   ;;  %s294_s5 = inlined_call_operand.vmem [shape: f32[1,32], index: 5, kind: input, shape index: {}]   ;;  %s295_s6 = inlined_call_operand.vmem [shape: f32[16,32], index: 6, kind: output, shape index: {}]  }
   0x1   :  { %v25_v0 = vld [vmem:[%s289_s1] sm:$0xff]  ;;  %v26_v1 = vld [vmem:[%s289_s1 + $0x8] sm:$0xff]  ;;  %v27_v2 = vld [vmem:[%s289_s1 + $0x10] sm:$0xff] }
   0x2   :  { %v195_v3 = vpack.c.bf16 %v26_v1, %v25_v0  ;;  %v28_v4 = vld [vmem:[%s289_s1 + $0x18] sm:$0xff]  ;;  %v23_v5 = vld [vmem:[%s290_s0] sm:$0xff]  ;;  %v24_v7 = vld [vmem:[%s290_s0 + $0x8] sm:$0xff] }
   0x3   :  { %v199_v6 = vpack.c.bf16 %v28_v4, %v27_v2  ;;  %192 = vmatprep.mubr.msk.f32.mxu0 %vm36_vm0, %v23_v5  ;;  %v173_v8 = vld [vmem:[%s291_s2] ss:$0 sm:$0xff]  ;;  %v119_v14 = vld [vmem:[%s292_s3 + $0x8] sm:$0xff] }
   0x4   :  { %196 = vmatprep.subr.bf16.mxu0 %v195_v3  ;;  %v118_v11 = vld [vmem:[%s292_s3] sm:$0xff] }
   0x5   :  { %198 = vmatpush3.bf16.msra.mxu0 %v195_v3  ;;  %v176_v36 = vld [vmem:[%s293_s4] ss:$0 sm:$0xff] }
   0x6   :  { %200 = vmatprep.subr.bf16.mxu0 %v199_v6  ;;  %v177_v38 = vld [vmem:[%s294_s5] ss:$0 sm:$0xff] }
   0x9   :  { %202 = vmatpush3.bf16.msra.mxu0 %v199_v6 }
   0xc   :  { %193 = vmatmul.mubr.msk.f32.vlgmr.msra.gmra.mrb[0].mxu0 %vm36_vm0, %v24_v7 }
  0xdf   :  { %v194_v9 = vpop.f32.mrb[0].mxu0 }
  0xe0   :  { %v109_v10 = vpop.f32.mrb[1].mxu0  ;;  %v115_v12 = vadd.f32 %v194_v9, %v173_v8 }
  0xe1   :  { %v110_v13 = vadd.f32 %v173_v8, %v109_v10 }
  0xe2   :  { %v121_v17 = vadd.f32 %v119_v14, %v115_v12 }
  0xe3   :  { %v120_v15 = vadd.f32 %v118_v11, %v110_v13 }
  0xe4   :  { %v127_v18 = vsel %vm36_vm0, %v121_v17, 0.0 }
  0xe5   :  { %v124_v16 = vsel %vm36_vm0, %v120_v15, 0.0 }
  0xe6   :  { %125 = vadd.xlane.f32.xlu0 %v124_v16 }
  0xea   :  { %128 = vadd.xlane.f32.xlu0 %v127_v18 }
 0x173   :  { %v126_v19 = vpop.xlane.xlu0 %125 }
 0x174   :  { %v131_v20 = vmul.f32 0.03125, %v126_v19 }
 0x176   :  { %v133_v21 = vsub.f32 %v120_v15, %v131_v20 }
 0x177   :  { %v129_v22 = vpop.xlane.xlu0 %128 }
 0x178   :  { %v132_v23 = vmul.f32 0.03125, %v129_v22  ;;  %v135_v24 = vmul.f32 %v133_v21, %v133_v21 }
 0x17a   :  { %v134_v25 = vsub.f32 %v121_v17, %v132_v23  ;;  %v137_v26 = vsel %vm36_vm0, %v135_v24, 0.0 }
 0x17b   :  { %138 = vadd.xlane.f32.xlu1 %v137_v26 }
 0x17c   :  { %v136_v27 = vmul.f32 %v134_v25, %v134_v25 }
 0x17e   :  { %v140_v28 = vsel %vm36_vm0, %v136_v27, 0.0 }
 0x17f   :  { %141 = vadd.xlane.f32.xlu1 %v140_v28 }
 0x208   :  { %v139_v29 = vpop.xlane.xlu1 %138 }
 0x209   :  { %v143_v30 = vmul.f32 0.03125, %v139_v29 }
 0x20b   :  { %v145_v31 = vadd.f32 1e-05, %v143_v30 }
 0x20c   :  { %v142_v32 = vpop.xlane.xlu1 %141 }
 0x20d   :  { %203 = vrsqrt.f32 %v145_v31  ;;  %v144_v33 = vmul.f32 0.03125, %v142_v32 }
 0x20f   :  { %v146_v34 = vadd.f32 1e-05, %v144_v33 }
 0x211   :  { %205 = vrsqrt.f32 %v146_v34 }
 0x217   :  { %v204_v35 = vpop.eup %203 }
 0x218   :  { %v149_v37 = vmul.f32 %v204_v35, %v133_v21 }
 0x21a   :  { %v157_v39 = vmul.f32 %v176_v36, %v149_v37 }
 0x21b   :  { %v206_v40 = vpop.eup %205 }
 0x21c   :  { %v165_v41 = vadd.f32 %v177_v38, %v157_v39  ;;  %v150_v42 = vmul.f32 %v206_v40, %v134_v25 }
 0x21e   :  { %167 = vst.msk [vmem:[%s295_s6] sm:$0xff] %vm36_vm0, %v165_v41  ;;  %v158_v43 = vmul.f32 %v176_v36, %v150_v42 }
 0x220   :  { %v166_v44 = vadd.f32 %v177_v38, %v158_v43 }
 0x222   :  { %168 = vst.msk [vmem:[%s295_s6 + $0x8] sm:$0xff] %vm36_vm0, %v166_v44 }

// kernel: seq2seq_forward.27
= control target key start
LH: loop header
LB: loop body
LE: loop exit
PB: predicated region body
PF: predicated region fallthrough
CT: control target
= control target key end

     0   :  { %s308_s1 = inlined_call_operand.vmem [shape: f32[128,128], index: 1, kind: input, shape index: {}]   ;;  %s309_s0 = inlined_call_operand.vmem [shape: f32[16,128], index: 0, kind: input, shape index: {}]   ;;  %s310_s2 = inlined_call_operand.vmem [shape: f32[1,128], index: 2, kind: input, shape index: {}]   ;;  %s311_s3 = inlined_call_operand.vmem [shape: f32[16,128], index: 3, kind: output, shape index: {}]  }
   0x1   :  { %v24_v0 = vld [vmem:[%s308_s1] sm:$0xff]  ;;  %v25_v1 = vld [vmem:[%s308_s1 + $0x8] sm:$0xff]  ;;  %v26_v2 = vld [vmem:[%s308_s1 + $0x10] sm:$0xff] }
   0x2   :  { %v193_v3 = vpack.c.bf16 %v25_v1, %v24_v0  ;;  %v27_v4 = vld [vmem:[%s308_s1 + $0x18] sm:$0xff]  ;;  %v28_v6 = vld [vmem:[%s308_s1 + $0x20] sm:$0xff]  ;;  %v29_v7 = vld [vmem:[%s308_s1 + $0x28] sm:$0xff] }
   0x3   :  { %v197_v5 = vpack.c.bf16 %v27_v4, %v26_v2  ;;  %v201_v8 = vpack.c.bf16 %v29_v7, %v28_v6  ;;  %v22_v9 = vld [vmem:[%s309_s0] sm:$0xff]  ;;  %v30_v10 = vld [vmem:[%s308_s1 + $0x30] sm:$0xff]  ;;  %v31_v11 = vld [vmem:[%s308_s1 + $0x38] sm:$0xff] }
   0x4   :  { %194 = vmatprep.subr.bf16.mxu0 %v193_v3  ;;  %190 = vmatprep.mubr.f32.mxu0 %v22_v9  ;;  %v205_v12 = vpack.c.bf16 %v31_v11, %v30_v10  ;;  %v32_v13 = vld [vmem:[%s308_s1 + $0x40] sm:$0xff]  ;;  %v33_v14 = vld [vmem:[%s308_s1 + $0x48] sm:$0xff]  ;;  %v34_v16 = vld [vmem:[%s308_s1 + $0x50] sm:$0xff] }
   0x5   :  { %196 = vmatpush3.bf16.msra.mxu0 %v193_v3  ;;  %v209_v15 = vpack.c.bf16 %v33_v14, %v32_v13  ;;  %v35_v17 = vld [vmem:[%s308_s1 + $0x58] sm:$0xff]  ;;  %v36_v19 = vld [vmem:[%s308_s1 + $0x60] sm:$0xff]  ;;  %v37_v20 = vld [vmem:[%s308_s1 + $0x68] sm:$0xff] }
   0x6   :  { %198 = vmatprep.subr.bf16.mxu0 %v197_v5  ;;  %v213_v18 = vpack.c.bf16 %v35_v17, %v34_v16  ;;  %v217_v21 = vpack.c.bf16 %v37_v20, %v36_v19  ;;  %v38_v22 = vld [vmem:[%s308_s1 + $0x70] sm:$0xff]  ;;  %v39_v23 = vld [vmem:[%s308_s1 + $0x78] sm:$0xff]  ;;  %v23_v25 = vld [vmem:[%s309_s0 + $0x8] sm:$0xff] }
   0x7   :  { %v221_v24 = vpack.c.bf16 %v39_v23, %v38_v22  ;;  %v139_v26 = vld [vmem:[%s310_s2] ss:$0 sm:$0xff] }
   0x9   :  { %200 = vmatpush3.bf16.msra.mxu0 %v197_v5 }
   0xa   :  { %202 = vmatprep.subr.bf16.mxu0 %v201_v8 }
   0xd   :  { %204 = vmatpush3.bf16.msra.mxu0 %v201_v8 }
   0xe   :  { %206 = vmatprep.subr.bf16.mxu0 %v205_v12 }
  0x11   :  { %208 = vmatpush3.bf16.msra.mxu0 %v205_v12 }
  0x12   :  { %210 = vmatprep.subr.bf16.mxu0 %v209_v15 }
  0x15   :  { %212 = vmatpush3.bf16.msra.mxu0 %v209_v15 }
  0x16   :  { %214 = vmatprep.subr.bf16.mxu0 %v213_v18 }
  0x19   :  { %216 = vmatpush3.bf16.msra.mxu0 %v213_v18 }
  0x1a   :  { %218 = vmatprep.subr.bf16.mxu0 %v217_v21 }
  0x1d   :  { %220 = vmatpush3.bf16.msra.mxu0 %v217_v21 }
  0x1e   :  { %222 = vmatprep.subr.bf16.mxu0 %v221_v24 }
  0x21   :  { %224 = vmatpush3.bf16.msra.mxu0 %v221_v24 }
  0x24   :  { %191 = vmatmul.mubr.f32.vlgmr.msra.gmra.mrb[0].mxu0 %v23_v25 }
  0xf7   :  { %v192_v27 = vpop.f32.mrb[0].mxu0 }
  0xf8   :  { %v132_v28 = vadd.f32 %v192_v27, %v139_v26  ;;  %v106_v29 = vpop.f32.mrb[1].mxu0 }
  0xf9   :  { %v131_v30 = vadd.f32 %v139_v26, %v106_v29 }
  0xfa   :  { %134 = vst [vmem:[%s311_s3 + $0x8] sm:$0xff] %v132_v28 }
  0xfb   :  { %133 = vst [vmem:[%s311_s3] sm:$0xff] %v131_v30 }

// kernel: seq2seq_forward.28
= control target key start
LH: loop header
LB: loop body
LE: loop exit
PB: predicated region body
PF: predicated region fallthrough
CT: control target
= control target key end

     0   :  { %s789_s18 = smov 0   ;;  %s791_s19 = smov 0   ;;  %s864_s0 = inlined_call_operand.vmem [shape: f32[2,4,8,8], index: 0, kind: input, shape index: {}]   ;;  %s865_s1 = inlined_call_operand.vmem [shape: f32[2,4,8,8], index: 1, kind: input, shape index: {}]   ;;  %s866_s2 = inlined_call_operand.vmem [shape: f32[2,4,8,8], index: 2, kind: input, shape index: {}]   ;;  %s867_s3 = inlined_call_operand.vmem [shape: f32[8,8], index: 3, kind: input, shape index: {}]   ;;  %s868_s4 = inlined_call_operand.vmem [shape: f32[2,1,8], index: 4, kind: input, shape index: {}]   ;;  %s869_s5 = inlined_call_operand.vmem [shape: f32[2,4,8,8], index: 5, kind: output, shape index: {}]  }
   0x1   :  { %s793_s20 = smov 0   ;;  %s795_s21 = smov 0  }
   0x2   :  { %s797_s22 = smov 0  }
   0x3 LB: > { %s24_s23 = sadd.s32 1, %s747_s20  ;;  %s27_s24 = sadd.s32 1, %s751_s21  ;;  %s755_s22 = sphi %s797_s22, %s15_s22   ;;  %s751_s21 = sphi %s795_s21, %s873_s21   ;;  %s747_s20 = sphi %s793_s20, %s872_s20   ;;  %s743_s19 = sphi %s791_s19, %s871_s19   ;;  %s739_s18 = sphi %s789_s18, %s870_s18  }
   0x4   : > { %p25_p0 = scmp.ge.s32.totalorder %s24_s23, 4  ;;  %p642_p1 = scmp.ge.s32.totalorder %s755_s22, 1 }
   0x5   : > { %p244_p2 = scmp.lt.s32.totalorder %s755_s22, 9 }
   0x6   : > { %s875_s23 = smov (%p25_p0, %s24_s23), 0  ;;  %s877_s24 = smov (!%p25_p0, %s27_s24), %s751_s21 }
   0x7   : > { %p245_p3 = pnand %p642_p1, %p244_p2  ;;  %p29_p4 = scmp.ge.s32.totalorder %s877_s24, 2 }
   0x8   : > { %p297_p5 = scmp.lt.s32.totalorder (!%p245_p3), %s743_s19, 1  ;;  %p299_p6 = scmp.lt.s32.totalorder (!%p245_p3), %s739_s18, 3  ;;  %v757_v0 = vmov (!%p245_p3), 0.0   ;;  %vm758_vm0 = vmmov (!%p245_p3), 0   ;;  %vm337_vm1 = vcmask (!%p245_p3), 64512   ;;  %v336_v4 = vld [vmem:[%s867_s3] sm:$0xff] (!%p245_p3) }
   0x9   : > { %s879_s24 = smov (%p29_p4, %s877_s24), 0  ;;  %248 = sbr.rel (%p245_p3) target bundleno = 614 (0x266), region = 40 }
   0xa   : > { %661 = vmatprep.subr.mxu0 (!%p245_p3), %v757_v0  ;;  %663 = vmatprep.mubr.msk.f32.mxu0 (!%p245_p3), %vm758_vm0, %v757_v0 }
   0xb   : > { %666 = vmatprep.subr.mxu1 (!%p245_p3), %v757_v0  ;;  %668 = vmatprep.mubr.msk.f32.mxu1 (!%p245_p3), %vm758_vm0, %v757_v0 }
  0x10   : > { %s881_s19 = smov (!%p297_p5, %s743_s19), 1  ;;  %s883_s18 = smov (!%p299_p6, %s739_s18), 3 }
  0x11   : > { %s643_s25 = sshll.u32 %s881_s19, 2  ;;  %s323_s11 = scalar_lea.vmem %s868_s4, %s881_s19 }
  0x12   : > { %s302_s26 = sadd.s32 %s643_s25, %s883_s18  ;;  %v653_v6 = vld [vmem:[%s323_s11] ss:$0 sm:$0xff] }
  0x13   : > { %s819_s27 = sshll.u32 %s302_s26, 3 }
  0x14   : > { %s312_s30 = scalar_lea.vmem %s865_s1, %s819_s27  ;;  %s304_s8 = scalar_lea.vmem %s864_s0, %s819_s27 }
  0x15   : > { %v334_v1 = vld [vmem:[%s312_s30] sm:$0xff]  ;;  %s320_s16 = scalar_lea.vmem %s866_s2, %s819_s27  ;;  %s331_s19 = scalar_lea.vmem %s869_s5, %s819_s27 }
  0x16   : > { %v332_v2 = vld [vmem:[%s304_s8] sm:$0xff]  ;;  %662 = vmatpush3.xpose.msk.msra.mxu0 %vm337_vm1, %v334_v1 }
  0x17   : > { %v333_v3 = vmul.f32 0.35355338, %v332_v2  ;;  %v335_v11 = vld [vmem:[%s320_s16] sm:$0xff] }
  0x18   : > { %667 = vmatpush3.msra.mxu1 %v335_v11 }
  0x19   : > { %664 = vmatmul.mubr.msk.f32.vlgmr.msra.gmra.mrb[0].mxu0 %vm337_vm1, %v333_v3 }
  0xec   : > { %v410_v5 = vpop.f32.mrb[0].mxu0 }
  0xed   : > { %v411_v7 = vadd.f32 %v410_v5, %v336_v4  ;;  %v665_v8 = vpop.f32.mrb[1].mxu0 }
  0xef   : > { %v421_v9 = vadd.f32 %v653_v6, %v411_v7 }
  0xf1   : > { %v422_v10 = vsel %vm337_vm1, %v421_v9, -inf }
  0xf2   : > { %423 = vmax.xlane.f32.xlu0 %v422_v10 }
 0x17f   : > { %v424_v12 = vpop.xlane.xlu0 %423 }
 0x180   : > { %v425_v13 = vsub.f32 %v421_v9, %v424_v12 }
 0x182   : > { %v426_v14 = vmul.f32 1.442695, %v425_v13 }
 0x184   : > { %713 = vpow2.f32 %v426_v14 }
 0x18e   : > { %v714_v15 = vpop.eup %713 }
 0x18f   : > { %669 = vmatmul.mubr.msk.f32.vlgmr.msra.gmra.mrb[0].mxu1 %vm337_vm1, %v714_v15  ;;  %v428_v16 = vsel %vm337_vm1, %v714_v15, 0.0 }
 0x190   : > { %429 = vadd.xlane.f32.xlu0 %v428_v16 }
 0x21d   : > { %v430_v17 = vpop.xlane.xlu0 %429 }
 0x21e   : > { %715 = vrcp.f32 %v430_v17 }
 0x228   : > { %v716_v18 = vpop.eup %715 }
 0x262   : > { %v501_v19 = vpop.f32.mrb[0].mxu1 }
 0x263   : > { %v505_v20 = vmul.f32 %v716_v18, %v501_v19  ;;  %v670_v21 = vpop.f32.mrb[1].mxu1 }
 0x265   : > { %506 = vst.msk [vmem:[%s331_s19] sm:$0xff] %vm337_vm1, %v505_v20 }
 0x266 PF: > { %s15_s22 = sadd.s32 1, %s755_s22   ;;  %s870_s18 = smov %s747_s20 }
 0x267   : > { %p12_p7 = scmp.ge.s32.totalorder %s15_s22, 10   ;;  %s871_s19 = smov %s751_s21 }
 0x268   : > { %s872_s20 = smov %s875_s23  ;;  %s873_s21 = smov %s879_s24 }
 0x269   :  { %14 = sbr.rel (!%p12_p7) target bundleno = 3 (0x3), region = 79 }

// kernel: seq2seq_forward.30
= control target key start
LH: loop header
LB: loop body
LE: loop exit
PB: predicated region body
PF: predicated region fallthrough
CT: control target
= control target key end

     0   :  { %vm39_vm0 = vcmask 261120   ;;  %vm138_vm1 = vcmask 523264   ;;  %s463_s1 = inlined_call_operand.vmem [shape: f32[32,64], index: 1, kind: input, shape index: {}]   ;;  %s464_s0 = inlined_call_operand.vmem [shape: f32[16,32], index: 0, kind: input, shape index: {}]   ;;  %s465_s3 = inlined_call_operand.vmem [shape: f32[64,32], index: 3, kind: input, shape index: {}]   ;;  %s466_s2 = inlined_call_operand.vmem [shape: f32[1,64], index: 2, kind: input, shape index: {}]   ;;  %s467_s4 = inlined_call_operand.vmem [shape: f32[1,32], index: 4, kind: input, shape index: {}]   ;;  %s468_s5 = inlined_call_operand.vmem [shape: f32[1,32], index: 5, kind: input, shape index: {}]   ;;  %s469_s6 = inlined_call_operand.vmem [shape: f32[1,32], index: 6, kind: input, shape index: {}]   ;;  %s470_s7 = inlined_call_operand.vmem [shape: f32[16,32], index: 7, kind: output, shape index: {}]  }
   0x1   :  { %v28_v0 = vld [vmem:[%s463_s1] sm:$0xff]  ;;  %v29_v1 = vld [vmem:[%s463_s1 + $0x8] sm:$0xff]  ;;  %v30_v2 = vld [vmem:[%s463_s1 + $0x10] sm:$0xff] }
   0x2   :  { %v327_v3 = vpack.c.bf16 %v29_v1, %v28_v0  ;;  %v31_v4 = vld [vmem:[%s463_s1 + $0x18] sm:$0xff]  ;;  %v26_v5 = vld [vmem:[%s464_s0] sm:$0xff]  ;;  %v124_v8 = vld [vmem:[%s465_s3 + $0x8] sm:$0xff] }
   0x3   :  { %v331_v6 = vpack.c.bf16 %v31_v4, %v30_v2  ;;  %305 = vmatprep.mubr.msk.f32.mxu0 %vm39_vm0, %v26_v5  ;;  %v123_v7 = vld [vmem:[%s465_s3] sm:$0xff]  ;;  %v125_v9 = vld [vmem:[%s465_s3 + $0x10] sm:$0xff]  ;;  %v126_v11 = vld [vmem:[%s465_s3 + $0x18] sm:$0xff] }
   0x4   :  { %328 = vmatprep.subr.bf16.mxu0 %v327_v3  ;;  %v335_v10 = vpack.c.bf16 %v124_v8, %v123_v7  ;;  %v339_v12 = vpack.c.bf16 %v126_v11, %v125_v9  ;;  %v127_v13 = vld [vmem:[%s465_s3 + $0x20] sm:$0xff]  ;;  %v128_v14 = vld [vmem:[%s465_s3 + $0x28] sm:$0xff]  ;;  %v129_v17 = vld [vmem:[%s465_s3 + $0x30] sm:$0xff] }
   0x5   :  { %330 = vmatpush3.bf16.msra.mxu0 %v327_v3  ;;  %v343_v15 = vpack.c.bf16 %v128_v14, %v127_v13  ;;  %v27_v16 = vld [vmem:[%s464_s0 + $0x8] sm:$0xff]  ;;  %v130_v18 = vld [vmem:[%s465_s3 + $0x38] sm:$0xff]  ;;  %v273_v20 = vld [vmem:[%s466_s2] ss:$0 sm:$0xff] }
   0x6   :  { %332 = vmatprep.subr.bf16.mxu0 %v331_v6  ;;  %336 = vmatprep.subr.bf16.mxu1 %v335_v10  ;;  %v347_v19 = vpack.c.bf16 %v130_v18, %v129_v17  ;;  %v276_v27 = vld [vmem:[%s467_s4] ss:$0 sm:$0xff] }
   0x7   :  { %338 = vmatpush3.bf16.msra.mxu1 %v335_v10  ;;  %v279_v53 = vld [vmem:[%s468_s5] ss:$0 sm:$0xff] }
   0x8   :  { %340 = vmatprep.subr.bf16.mxu1 %v339_v12  ;;  %v280_v55 = vld [vmem:[%s469_s6] ss:$0 sm:$0xff] }
   0x9   :  { %334 = vmatpush3.bf16.msra.mxu0 %v331_v6 }
   0xb   :  { %342 = vmatpush3.bf16.msra.mxu1 %v339_v12 }
   0xc   :  { %306 = vmatmul.mubr.msk.f32.vlgmr.msra.gmra.mrb[0].mxu0 %vm39_vm0, %v27_v16  ;;  %344 = vmatprep.subr.bf16.mxu1 %v343_v15 }
   0xf   :  { %346 = vmatpush3.bf16.msra.mxu1 %v343_v15 }
  0x10   :  { %348 = vmatprep.subr.bf16.mxu1 %v347_v19 }
  0x13   :  { %350 = vmatpush3.bf16.msra.mxu1 %v347_v19 }
  0xdf   :  { %v307_v21 = vpop.f32.mrb[0].mxu0 }
  0xe0   :  { %v118_v22 = vadd.f32 %v307_v21, %v273_v20  ;;  %v112_v23 = vpop.f32.mrb[1].mxu0 }
  0xe1   :  { %v113_v24 = vadd.f32 %v273_v20, %v112_v23 }
  0xe2   :  { %v122_v26 = vmax.f32 %v118_v22, 0.0 }
  0xe3   :  { %v121_v25 = vmax.f32 %v113_v24, 0.0 }
  0xe5   :  { %324 = vmatprep.mubr.msk.f32.mxu1 %vm138_vm1, %v121_v25 }
  0xe6   :  { %325 = vmatmul.mubr.msk.f32.vlgmr.msra.gmra.mrb[0].mxu1 %vm138_vm1, %v122_v26 }
 0x1b9   :  { %v326_v28 = vpop.f32.mrb[0].mxu1 }
 0x1ba   :  { %v211_v29 = vpop.f32.mrb[1].mxu1  ;;  %v217_v30 = vadd.f32 %v326_v28, %v276_v27 }
 0x1bb   :  { %v212_v31 = vadd.f32 %v276_v27, %v211_v29 }
 0x1bc   :  { %v221_v34 = vadd.f32 %v217_v30, %v27_v16 }
 0x1bd   :  { %v220_v32 = vadd.f32 %v212_v31, %v26_v5 }
 0x1be   :  { %v227_v35 = vsel %vm39_vm0, %v221_v34, 0.0 }
 0x1bf   :  { %v224_v33 = vsel %vm39_vm0, %v220_v32, 0.0 }
 0x1c0   :  { %225 = vadd.xlane.f32.xlu0 %v224_v33 }
 0x1c4   :  { %228 = vadd.xlane.f32.xlu0 %v227_v35 }
 0x24d   :  { %v226_v36 = vpop.xlane.xlu0 %225 }
 0x24e   :  { %v231_v37 = vmul.f32 0.03125, %v226_v36 }
 0x250   :  { %v233_v38 = vsub.f32 %v220_v32, %v231_v37 }
 0x251   :  { %v229_v39 = vpop.xlane.xlu0 %228 }
 0x252   :  { %v232_v40 = vmul.f32 0.03125, %v229_v39  ;;  %v235_v41 = vmul.f32 %v233_v38, %v233_v38 }
 0x254   :  { %v234_v42 = vsub.f32 %v221_v34, %v232_v40  ;;  %v237_v43 = vsel %vm39_vm0, %v235_v41, 0.0 }
 0x255   :  { %238 = vadd.xlane.f32.xlu1 %v237_v43 }
 0x256   :  { %v236_v44 = vmul.f32 %v234_v42, %v234_v42 }
 0x258   :  { %v240_v45 = vsel %vm39_vm0, %v236_v44, 0.0 }
 0x259   :  { %241 = vadd.xlane.f32.xlu1 %v240_v45 }
 0x2e2   :  { %v239_v46 = vpop.xlane.xlu1 %238 }
 0x2e3   :  { %v243_v47 = vmul.f32 0.03125, %v239_v46 }
 0x2e5   :  { %v245_v48 = vadd.f32 1e-05, %v243_v47 }
 0x2e6   :  { %v242_v49 = vpop.xlane.xlu1 %241 }
 0x2e7   :  { %351 = vrsqrt.f32 %v245_v48  ;;  %v244_v50 = vmul.f32 0.03125, %v242_v49 }
 0x2e9   :  { %v246_v51 = vadd.f32 1e-05, %v244_v50 }
 0x2eb   :  { %353 = vrsqrt.f32 %v246_v51 }
 0x2f1   :  { %v352_v52 = vpop.eup %351 }
 0x2f2   :  { %v249_v54 = vmul.f32 %v352_v52, %v233_v38 }
 0x2f4   :  { %v257_v56 = vmul.f32 %v279_v53, %v249_v54 }
 0x2f5   :  { %v354_v57 = vpop.eup %353 }
 0x2f6   :  { %v265_v58 = vadd.f32 %v280_v55, %v257_v56  ;;  %v250_v59 = vmul.f32 %v354_v57, %v234_v42 }
 0x2f8   :  { %267 = vst.msk [vmem:[%s470_s7] sm:$0xff] %vm39_vm0, %v265_v58  ;;  %v258_v60 = vmul.f32 %v279_v53, %v250_v59 }
 0x2fa   :  { %v266_v61 = vadd.f32 %v280_v55, %v258_v60 }
 0x2fc   :  { %268 = vst.msk [vmem:[%s470_s7 + $0x8] sm:$0xff] %vm39_vm0, %v266_v61 }

// kernel: seq2seq_forward.35
= control target key start
LH: loop header
LB: loop body
LE: loop exit
PB: predicated region body
PF: predicated region fallthrough
CT: control target
= control target key end

     0   :  { %vm18_vm0 = vcmask 261120   ;;  %s118_s0 = inlined_call_operand.vmem [shape: f32[16,32], index: 0, kind: input, shape index: {}]   ;;  %s119_s1 = inlined_call_operand.vmem [shape: f32[1,32], index: 1, kind: input, shape index: {}]   ;;  %s120_s2 = inlined_call_operand.vmem [shape: f32[1,32], index: 2, kind: input, shape index: {}]   ;;  %s121_s3 = inlined_call_operand.vmem [shape: f32[16,32], index: 3, kind: output, shape index: {}]  }
   0x1   :  { %v14_v0 = vld [vmem:[%s118_s0] sm:$0xff]  ;;  %v15_v1 = vld [vmem:[%s118_s0 + $0x8] sm:$0xff] }
   0x2   :  { %v19_v2 = vsel %vm18_vm0, %v14_v0, 0.0  ;;  %v22_v3 = vsel %vm18_vm0, %v15_v1, 0.0  ;;  %v68_v21 = vld [vmem:[%s119_s1] ss:$0 sm:$0xff] }
   0x3   :  { %20 = vadd.xlane.f32.xlu0 %v19_v2  ;;  %v69_v23 = vld [vmem:[%s120_s2] ss:$0 sm:$0xff] }
   0x7   :  { %23 = vadd.xlane.f32.xlu0 %v22_v3 }
  0x90   :  { %v21_v4 = vpop.xlane.xlu0 %20 }
  0x91   :  { %v26_v5 = vmul.f32 0.03125, %v21_v4 }
  0x93   :  { %v28_v6 = vsub.f32 %v14_v0, %v26_v5 }
  0x94   :  { %v24_v7 = vpop.xlane.xlu0 %23 }
  0x95   :  { %v27_v8 = vmul.f32 0.03125, %v24_v7  ;;  %v30_v9 = vmul.f32 %v28_v6, %v28_v6 }
  0x97   :  { %v29_v10 = vsub.f32 %v15_v1, %v27_v8  ;;  %v32_v11 = vsel %vm18_vm0, %v30_v9, 0.0 }
  0x98   :  { %33 = vadd.xlane.f32.xlu1 %v32_v11 }
  0x99   :  { %v31_v12 = vmul.f32 %v29_v10, %v29_v10 }
  0x9b   :  { %v35_v13 = vsel %vm18_vm0, %v31_v12, 0.0 }
  0x9c   :  { %36 = vadd.xlane.f32.xlu1 %v35_v13 }
 0x125   :  { %v34_v14 = vpop.xlane.xlu1 %33 }
 0x126   :  { %v38_v15 = vmul.f32 0.03125, %v34_v14 }
 0x128   :  { %v40_v16 = vadd.f32 1e-05, %v38_v15 }
 0x129   :  { %v37_v17 = vpop.xlane.xlu1 %36 }
 0x12a   :  { %70 = vrsqrt.f32 %v40_v16  ;;  %v39_v18 = vmul.f32 0.03125, %v37_v17 }
 0x12c   :  { %v41_v19 = vadd.f32 1e-05, %v39_v18 }
 0x12e   :  { %72 = vrsqrt.f32 %v41_v19 }
 0x134   :  { %v71_v20 = vpop.eup %70 }
 0x135   :  { %v44_v22 = vmul.f32 %v71_v20, %v28_v6 }
 0x137   :  { %v52_v24 = vmul.f32 %v68_v21, %v44_v22 }
 0x138   :  { %v73_v25 = vpop.eup %72 }
 0x139   :  { %v60_v26 = vadd.f32 %v69_v23, %v52_v24  ;;  %v45_v27 = vmul.f32 %v73_v25, %v29_v10 }
 0x13b   :  { %62 = vst.msk [vmem:[%s121_s3] sm:$0xff] %vm18_vm0, %v60_v26  ;;  %v53_v28 = vmul.f32 %v68_v21, %v45_v27 }
 0x13d   :  { %v61_v29 = vadd.f32 %v69_v23, %v53_v28 }
 0x13f   :  { %63 = vst.msk [vmem:[%s121_s3 + $0x8] sm:$0xff] %vm18_vm0, %v61_v29 }

// kernel: seq2seq_forward.37
= control target key start
LH: loop header
LB: loop body
LE: loop exit
PB: predicated region body
PF: predicated region fallthrough
CT: control target
= control target key end

     0   :  { %s797_s18 = smov 0   ;;  %s799_s19 = smov 0   ;;  %s866_s0 = inlined_call_operand.vmem [shape: f32[2,4,6,8], index: 0, kind: input, shape index: {}]   ;;  %s867_s1 = inlined_call_operand.vmem [shape: f32[2,4,6,8], index: 1, kind: input, shape index: {}]   ;;  %s868_s2 = inlined_call_operand.vmem [shape: f32[2,4,6,8], index: 2, kind: input, shape index: {}]   ;;  %s869_s3 = inlined_call_operand.vmem [shape: f32[6,6], index: 3, kind: input, shape index: {}]   ;;  %s870_s4 = inlined_call_operand.vmem [shape: f32[2,1,6], index: 4, kind: input, shape index: {}]   ;;  %s871_s5 = inlined_call_operand.vmem [shape: f32[2,4,6,8], index: 5, kind: output, shape index: {}]  }
   0x1   :  { %s801_s20 = smov 0   ;;  %s803_s21 = smov 0  }
   0x2   :  { %s805_s22 = smov 0  }
   0x3 LB: > { %s24_s23 = sadd.s32 1, %s755_s20  ;;  %s27_s24 = sadd.s32 1, %s759_s21  ;;  %s763_s22 = sphi %s805_s22, %s15_s22   ;;  %s759_s21 = sphi %s803_s21, %s875_s21   ;;  %s755_s20 = sphi %s801_s20, %s874_s20   ;;  %s751_s19 = sphi %s799_s19, %s873_s19   ;;  %s747_s18 = sphi %s797_s18, %s872_s18  }
   0x4   : > { %p25_p0 = scmp.ge.s32.totalorder %s24_s23, 4  ;;  %p649_p1 = scmp.ge.s32.totalorder %s763_s22, 1 }
   0x5   : > { %p244_p2 = scmp.lt.s32.totalorder %s763_s22, 9 }
   0x6   : > { %s877_s23 = smov (%p25_p0, %s24_s23), 0  ;;  %s879_s24 = smov (!%p25_p0, %s27_s24), %s759_s21 }
   0x7   : > { %p245_p3 = pnand %p649_p1, %p244_p2  ;;  %p29_p4 = scmp.ge.s32.totalorder %s879_s24, 2 }
   0x8   : > { %p297_p5 = scmp.lt.s32.totalorder (!%p245_p3), %s751_s19, 1  ;;  %p299_p6 = scmp.lt.s32.totalorder (!%p245_p3), %s747_s18, 3  ;;  %v765_v0 = vmov (!%p245_p3), 0.0   ;;  %vm766_vm0 = vmmov (!%p245_p3), 0   ;;  %vm337_vm1 = vcmask (!%p245_p3), 64512   ;;  %vm422_vm2 = vcmask (!%p245_p3), 46080  }
   0x9   : > { %s881_s24 = smov (%p29_p4, %s879_s24), 0  ;;  %248 = sbr.rel (%p245_p3) target bundleno = 614 (0x266), region = 40 }
   0xa   : > { %669 = vmatprep.subr.mxu0 (!%p245_p3), %v765_v0  ;;  %671 = vmatprep.mubr.msk.f32.mxu0 (!%p245_p3), %vm766_vm0, %v765_v0  ;;  %v336_v4 = vld [vmem:[%s869_s3] sm:$0x3f] (!%p245_p3)  ;;  %vm437_vm3 = vcmask (!%p245_p3), 1045504   ;;  %vm433_vm4 = vcmask (!%p245_p3), 48128   ;;  %vm512_vm5 = vcmask (!%p245_p3), 62464  }
   0xb   : > { %674 = vmatprep.subr.mxu1 (!%p245_p3), %v765_v0  ;;  %676 = vmatprep.mubr.msk.f32.mxu1 (!%p245_p3), %vm766_vm0, %v765_v0 }
  0x10   : > { %s883_s19 = smov (!%p297_p5, %s751_s19), 1  ;;  %s885_s18 = smov (!%p299_p6, %s747_s18), 3 }
  0x11   : > { %s650_s25 = sshll.u32 %s883_s19, 2  ;;  %s323_s11 = scalar_lea.vmem %s870_s4, %s883_s19 }
  0x12   : > { %s302_s26 = sadd.s32 %s650_s25, %s885_s18  ;;  %v660_v6 = vld [vmem:[%s323_s11] ss:$0 sm:$0xff] }
  0x13   : > { %s827_s27 = sshll.u32 %s302_s26, 3 }
  0x14   : > { %s312_s30 = scalar_lea.vmem %s867_s1, %s827_s27  ;;  %s304_s8 = scalar_lea.vmem %s866_s0, %s827_s27 }
  0x15   : > { %v334_v1 = vld [vmem:[%s312_s30] sm:$0x3f]  ;;  %s320_s16 = scalar_lea.vmem %s868_s2, %s827_s27  ;;  %s331_s19 = scalar_lea.vmem %s871_s5, %s827_s27 }
  0x16   : > { %v332_v2 = vld [vmem:[%s304_s8] sm:$0x3f]  ;;  %670 = vmatpush3.xpose.msk.msra.mxu0 %vm337_vm1, %v334_v1 }
  0x17   : > { %v333_v3 = vmul.f32 0.35355338, %v332_v2  ;;  %v335_v11 = vld [vmem:[%s320_s16] sm:$0x3f] }
  0x18   : > { %675 = vmatpush3.msk.msra.mxu1 %vm437_vm3, %v335_v11 }
  0x19   : > { %672 = vmatmul.mubr.msk.f32.vlgmr.msra.gmra.mrb[0].mxu0 %vm337_vm1, %v333_v3 }
  0xec   : > { %v410_v5 = vpop.f32.mrb[0].mxu0 }
  0xed   : > { %v411_v7 = vadd.f32 %v410_v5, %v336_v4  ;;  %v673_v8 = vpop.f32.mrb[1].mxu0 }
  0xef   : > { %v421_v9 = vadd.f32 %v660_v6, %v411_v7 }
  0xf1   : > { %v423_v10 = vsel %vm422_vm2, %v421_v9, -inf }
  0xf2   : > { %424 = vmax.xlane.f32.xlu0 %v423_v10 }
 0x17f   : > { %v425_v12 = vpop.xlane.xlu0 %424 }
 0x180   : > { %v426_v13 = vsub.f32 %v421_v9, %v425_v12 }
 0x182   : > { %v427_v14 = vmul.f32 1.442695, %v426_v13 }
 0x184   : > { %721 = vpow2.f32 %v427_v14 }
 0x18e   : > { %v722_v15 = vpop.eup %721 }
 0x18f   : > { %677 = vmatmul.mubr.msk.f32.vlgmr.msra.gmra.mrb[0].mxu1 %vm433_vm4, %v722_v15  ;;  %v429_v16 = vsel %vm422_vm2, %v722_v15, 0.0 }
 0x190   : > { %430 = vadd.xlane.f32.xlu0 %v429_v16 }
 0x21d   : > { %v431_v17 = vpop.xlane.xlu0 %430 }
 0x21e   : > { %723 = vrcp.f32 %v431_v17 }
 0x228   : > { %v724_v18 = vpop.eup %723 }
 0x262   : > { %v507_v19 = vpop.f32.mrb[0].mxu1 }
 0x263   : > { %v511_v20 = vmul.f32 %v724_v18, %v507_v19  ;;  %v678_v21 = vpop.f32.mrb[1].mxu1 }
 0x265   : > { %513 = vst.msk [vmem:[%s331_s19] sm:$0x3f] %vm512_vm5, %v511_v20 }
 0x266 PF: > { %s15_s22 = sadd.s32 1, %s763_s22   ;;  %s872_s18 = smov %s755_s20 }
 0x267   : > { %p12_p7 = scmp.ge.s32.totalorder %s15_s22, 10   ;;  %s873_s19 = smov %s759_s21 }
 0x268   : > { %s874_s20 = smov %s877_s23  ;;  %s875_s21 = smov %s881_s24 }
 0x269   :  { %14 = sbr.rel (!%p12_p7) target bundleno = 3 (0x3), region = 79 }

// kernel: seq2seq_forward.41
= control target key start
LH: loop header
LB: loop body
LE: loop exit
PB: predicated region body
PF: predicated region fallthrough
CT: control target
= control target key end

     0   :  { %s790_s18 = smov 0   ;;  %s792_s19 = smov 0   ;;  %s865_s0 = inlined_call_operand.vmem [shape: f32[2,4,6,8], index: 0, kind: input, shape index: {}]   ;;  %s866_s1 = inlined_call_operand.vmem [shape: f32[2,4,8,8], index: 1, kind: input, shape index: {}]   ;;  %s867_s2 = inlined_call_operand.vmem [shape: f32[2,4,8,8], index: 2, kind: input, shape index: {}]   ;;  %s868_s3 = inlined_call_operand.vmem [shape: f32[6,8], index: 3, kind: input, shape index: {}]   ;;  %s869_s4 = inlined_call_operand.vmem [shape: f32[2,1,8], index: 4, kind: input, shape index: {}]   ;;  %s870_s5 = inlined_call_operand.vmem [shape: f32[2,4,6,8], index: 5, kind: output, shape index: {}]  }
   0x1   :  { %s794_s20 = smov 0   ;;  %s796_s21 = smov 0  }
   0x2   :  { %s798_s22 = smov 0  }
   0x3 LB: > { %s24_s23 = sadd.s32 1, %s748_s20  ;;  %s27_s24 = sadd.s32 1, %s752_s21  ;;  %s756_s22 = sphi %s798_s22, %s15_s22   ;;  %s752_s21 = sphi %s796_s21, %s874_s21   ;;  %s748_s20 = sphi %s794_s20, %s873_s20   ;;  %s744_s19 = sphi %s792_s19, %s872_s19   ;;  %s740_s18 = sphi %s790_s18, %s871_s18  }
   0x4   : > { %p25_p0 = scmp.ge.s32.totalorder %s24_s23, 4  ;;  %p643_p1 = scmp.ge.s32.totalorder %s756_s22, 1 }
   0x5   : > { %p244_p2 = scmp.lt.s32.totalorder %s756_s22, 9 }
   0x6   : > { %s876_s23 = smov (%p25_p0, %s24_s23), 0  ;;  %s878_s24 = smov (!%p25_p0, %s27_s24), %s752_s21 }
   0x7   : > { %p245_p3 = pnand %p643_p1, %p244_p2  ;;  %p29_p4 = scmp.ge.s32.totalorder %s878_s24, 2 }
   0x8   : > { %p297_p5 = scmp.lt.s32.totalorder (!%p245_p3), %s744_s19, 1  ;;  %p299_p6 = scmp.lt.s32.totalorder (!%p245_p3), %s740_s18, 3  ;;  %v758_v0 = vmov (!%p245_p3), 0.0   ;;  %vm759_vm0 = vmmov (!%p245_p3), 0   ;;  %vm337_vm1 = vcmask (!%p245_p3), 64512   ;;  %vm422_vm2 = vcmask (!%p245_p3), 62464  }
   0x9   : > { %s880_s24 = smov (%p29_p4, %s878_s24), 0  ;;  %248 = sbr.rel (%p245_p3) target bundleno = 614 (0x266), region = 40 }
   0xa   : > { %662 = vmatprep.subr.mxu0 (!%p245_p3), %v758_v0  ;;  %664 = vmatprep.mubr.msk.f32.mxu0 (!%p245_p3), %vm759_vm0, %v758_v0  ;;  %v336_v4 = vld [vmem:[%s868_s3] sm:$0x3f] (!%p245_p3) }
   0xb   : > { %667 = vmatprep.subr.mxu1 (!%p245_p3), %v758_v0  ;;  %669 = vmatprep.mubr.msk.f32.mxu1 (!%p245_p3), %vm759_vm0, %v758_v0 }
  0x10   : > { %s882_s19 = smov (!%p297_p5, %s744_s19), 1  ;;  %s884_s18 = smov (!%p299_p6, %s740_s18), 3 }
  0x11   : > { %s644_s25 = sshll.u32 %s882_s19, 2  ;;  %s323_s11 = scalar_lea.vmem %s869_s4, %s882_s19 }
  0x12   : > { %s302_s26 = sadd.s32 %s644_s25, %s884_s18  ;;  %v654_v6 = vld [vmem:[%s323_s11] ss:$0 sm:$0xff] }
  0x13   : > { %s820_s27 = sshll.u32 %s302_s26, 3 }
  0x14   : > { %s312_s30 = scalar_lea.vmem %s866_s1, %s820_s27  ;;  %s304_s8 = scalar_lea.vmem %s865_s0, %s820_s27 }
  0x15   : > { %v334_v1 = vld [vmem:[%s312_s30] sm:$0xff]  ;;  %s320_s16 = scalar_lea.vmem %s867_s2, %s820_s27  ;;  %s331_s19 = scalar_lea.vmem %s870_s5, %s820_s27 }
  0x16   : > { %v332_v2 = vld [vmem:[%s304_s8] sm:$0x3f]  ;;  %663 = vmatpush3.xpose.msk.msra.mxu0 %vm337_vm1, %v334_v1 }
  0x17   : > { %v333_v3 = vmul.f32 0.35355338, %v332_v2  ;;  %v335_v11 = vld [vmem:[%s320_s16] sm:$0xff] }
  0x18   : > { %668 = vmatpush3.msra.mxu1 %v335_v11 }
  0x19   : > { %665 = vmatmul.mubr.msk.f32.vlgmr.msra.gmra.mrb[0].mxu0 %vm337_vm1, %v333_v3 }
  0xec   : > { %v410_v5 = vpop.f32.mrb[0].mxu0 }
  0xed   : > { %v411_v7 = vadd.f32 %v410_v5, %v336_v4  ;;  %v666_v8 = vpop.f32.mrb[1].mxu0 }
  0xef   : > { %v421_v9 = vadd.f32 %v654_v6, %v411_v7 }
  0xf1   : > { %v423_v10 = vsel %vm422_vm2, %v421_v9, -inf }
  0xf2   : > { %424 = vmax.xlane.f32.xlu0 %v423_v10 }
 0x17f   : > { %v425_v12 = vpop.xlane.xlu0 %424 }
 0x180   : > { %v426_v13 = vsub.f32 %v421_v9, %v425_v12 }
 0x182   : > { %v427_v14 = vmul.f32 1.442695, %v426_v13 }
 0x184   : > { %714 = vpow2.f32 %v427_v14 }
 0x18e   : > { %v715_v15 = vpop.eup %714 }
 0x18f   : > { %670 = vmatmul.mubr.msk.f32.vlgmr.msra.gmra.mrb[0].mxu1 %vm337_vm1, %v715_v15  ;;  %v429_v16 = vsel %vm422_vm2, %v715_v15, 0.0 }
 0x190   : > { %430 = vadd.xlane.f32.xlu0 %v429_v16 }
 0x21d   : > { %v431_v17 = vpop.xlane.xlu0 %430 }
 0x21e   : > { %716 = vrcp.f32 %v431_v17 }
 0x228   : > { %v717_v18 = vpop.eup %716 }
 0x262   : > { %v502_v19 = vpop.f32.mrb[0].mxu1 }
 0x263   : > { %v506_v20 = vmul.f32 %v717_v18, %v502_v19  ;;  %v671_v21 = vpop.f32.mrb[1].mxu1 }
 0x265   : > { %507 = vst.msk [vmem:[%s331_s19] sm:$0x3f] %vm422_vm2, %v506_v20 }
 0x266 PF: > { %s15_s22 = sadd.s32 1, %s756_s22   ;;  %s871_s18 = smov %s748_s20 }
 0x267   : > { %p12_p7 = scmp.ge.s32.totalorder %s15_s22, 10   ;;  %s872_s19 = smov %s752_s21 }
 0x268   : > { %s873_s20 = smov %s876_s23  ;;  %s874_s21 = smov %s880_s24 }
 0x269   :  { %14 = sbr.rel (!%p12_p7) target bundleno = 3 (0x3), region = 79 }

</bundles_post_ra>
